<compile_context>
chip_gen: v6e
topology: v6e:2x2x1
jax: 0.10.0
libtpu: 0.0.40
codegen_flags: <defaults>
</compile_context>

<pallas_src>
import jax
import jax.numpy as jnp
from jax.experimental import pallas as pl
from jax.experimental.pallas import tpu as pltpu


def _st1_head_kernel(hs_ref, add_ref, w_att_ref, w1_h_ref, w1_a_ref, b1_ref,
                     w2_ref, b2_ref, out_ref, m_scr, l_scr, acc_scr):
    """Grid = (batch tiles, sequence tiles); the sequence axis is the reduction.

    hs_ref  : (Bt, St, H)  encoder dtype   hidden-state tile
    add_ref : (Bt, A)      f32             additional features
    w_att   : (1, 1, H)                    Attention.attention weight (H part)
    w1_h    : (H, Hd) / w1_a : (A, Hd) / b1 : (1, Hd)     self.linear (split)
    w2      : (Hd, Cp) / b2 : (1, Cp)                     self.head (lane-padded)
    out_ref : (Bt, Cp)     f32             logits, written on the last seq step
    m/l/acc : (Bt,1,1) / (Bt,1,1) / (Bt,1,H) f32          online-softmax carry
    """
    si = pl.program_id(1)
    Bt, St, H = hs_ref.shape

    @pl.when(si == 0)
    def _():
        m_scr[...] = jnp.full(m_scr.shape, -jnp.inf, m_scr.dtype)
        l_scr[...] = jnp.zeros(l_scr.shape, l_scr.dtype)
        acc_scr[...] = jnp.zeros(acc_scr.shape, acc_scr.dtype)

    hs = hs_ref[...]                                           # (Bt, St, H)

    # Attention scores: one shared "query" (= attention weight vector) per
    # batch row, contracted on the MXU with f32 accumulation.  b_att and the
    # seq-constant additional-feature term cancel in the softmax -> dropped.
    q = jnp.broadcast_to(w_att_ref[...], (Bt, 1, H))           # (Bt, 1, H)
    s = jnp.einsum("bqd,bkd->bqk", q, hs,
                   preferred_element_type=jnp.float32)         # (Bt, 1, St)

    # Online softmax over the sequence (torch.softmax(scores, dim=1)).
    m_prev = m_scr[...]
    m_new = jnp.maximum(m_prev, jnp.max(s, axis=-1, keepdims=True))
    alpha = jnp.exp(m_prev - m_new)
    p = jnp.exp(s - m_new)                                     # (Bt, 1, St)
    l_scr[...] = alpha * l_scr[...] + jnp.sum(p, axis=-1, keepdims=True)
    acc_scr[...] = alpha * acc_scr[...] + jnp.einsum(
        "bqk,bkd->bqd", p.astype(hs.dtype), hs,
        preferred_element_type=jnp.float32)                    # (Bt, 1, H)
    m_scr[...] = m_new

    # Last sequence step: normalize, then the two dense layers on the MXU.
    @pl.when(si == pl.num_programs(1) - 1)
    def _():
        pooled = acc_scr[...] / l_scr[...]                     # exact divide
        pooled = jnp.sum(pooled, axis=1)                       # (Bt, H): fold unit q-dim
        pooled = pooled.astype(w1_h_ref.dtype)
        # dropout is identity at inference time
        x = (jnp.dot(pooled, w1_h_ref[...], preferred_element_type=jnp.float32)
             + jnp.dot(add_ref[...], w1_a_ref[...],
                       preferred_element_type=jnp.float32)
             + b1_ref[...])
        x = jnp.maximum(x, 0.0).astype(w2_ref.dtype)           # ReLU
        out_ref[...] = (jnp.dot(x, w2_ref[...],
                                preferred_element_type=jnp.float32)
                        + b2_ref[...]).astype(out_ref.dtype)


def st1_classifier_forward(hidden_states, additional_features, params,
                           *, block_b=None, block_s=None):
    """hidden_states: (B, S, H) encoder output; additional_features: (B, A) | None."""
    B, S, H = hidden_states.shape
    Hd = params["w1"].shape[1]
    C = params["w2"].shape[1]
    C_pad = 128 * pl.cdiv(C, 128)

    # Consume the encoder's dtype directly (a standalone bf16 cast would add a
    # full extra HBM pass over the dominant tensor).
    act_dtype = hidden_states.dtype
    compute_dtype = jnp.bfloat16 if act_dtype == jnp.bfloat16 else jnp.float32

    # Split the combined-feature weights into hidden-state / feature parts.
    w_att_h = params["w_att"][:H, :].reshape(1, 1, H).astype(compute_dtype)
    w1_h = params["w1"][:H, :].astype(compute_dtype)
    if additional_features is not None:
        A = additional_features.shape[-1]
        add_feats = additional_features.astype(jnp.float32)
        w1_a = params["w1"][H:H + A, :].astype(jnp.float32)
    else:
        # Fixed kernel signature: zero dummy features contribute exactly 0.
        A = 8
        add_feats = jnp.zeros((B, A), jnp.float32)
        w1_a = jnp.zeros((A, Hd), jnp.float32)
    b1 = params["b1"].astype(jnp.float32)
    w2_p = jnp.pad(params["w2"], ((0, 0), (0, C_pad - C))).astype(compute_dtype)
    b2_p = jnp.pad(params["b2"], ((0, 0), (0, C_pad - C))).astype(jnp.float32)

    # ---- VMEM-aware tiling -------------------------------------------------
    try:
        vmem_cap = int(pltpu.get_tpu_info().vmem_capacity_bytes)
    except Exception:                      # noqa: BLE001 - conservative fallback
        vmem_cap = 64 * 1024 * 1024        # v7x (smallest VMEM) as the default
    act_budget = int(vmem_cap * 0.45)      # double-buffered activation tiles
    vmem_limit = min(int(vmem_cap * 0.85), 110 * 1024 * 1024)

    # Sequence tile must divide S exactly (keeps the online softmax free of
    # padded-key masking); real DistilBERT S (e.g. 512) hits the fast path.
    if block_s is None:
        block_s = S
        if S > 512:
            for cand in range(512, 7, -8):
                if S % cand == 0:
                    block_s = cand
                    break
    block_s = min(block_s, S)
    if S % block_s != 0 or (block_s != S and block_s % 8 != 0):
        block_s = S

    itemsize = act_dtype.itemsize
    if block_b is None:
        per_row = 2 * block_s * H * itemsize   # double-buffered bytes / batch row
        bt_cap = max(8, (act_budget // max(per_row, 1)) // 8 * 8)
        if B <= 8:
            block_b = B
        else:
            block_b = max(8, min(bt_cap, 256, (B // 8) * 8))
            # v7x megacore: keep >= 2 batch steps so both TensorCores get work.
            if B >= 16 and pl.cdiv(B, block_b) < 2:
                block_b = max(8, ((pl.cdiv(B, 2) + 7) // 8) * 8)
    grid_b = pl.cdiv(B, block_b)
    grid_s = pl.cdiv(S, block_s)
    # A padded last batch tile only produces garbage in rows that are sliced
    # off below (all per-row computations are independent).

    const2 = lambda b, s: (0, 0)
    const3 = lambda b, s: (0, 0, 0)
    out = pl.pallas_call(
        _st1_head_kernel,
        out_shape=jax.ShapeDtypeStruct((B, C_pad), jnp.float32),
        grid=(grid_b, grid_s),
        in_specs=[
            pl.BlockSpec((block_b, block_s, H), lambda b, s: (b, s, 0)),
            pl.BlockSpec((block_b, A), lambda b, s: (b, 0)),
            pl.BlockSpec((1, 1, H), const3),       # attention weight (H part)
            pl.BlockSpec((H, Hd), const2),         # linear weight (H part)
            pl.BlockSpec((A, Hd), const2),         # linear weight (A part)
            pl.BlockSpec((1, Hd), const2),         # linear bias
            pl.BlockSpec((Hd, C_pad), const2),     # head weight (lane-padded)
            pl.BlockSpec((1, C_pad), const2),      # head bias (lane-padded)
        ],
        out_specs=pl.BlockSpec((block_b, C_pad), lambda b, s: (b, 0)),
        scratch_shapes=[
            pltpu.VMEM((block_b, 1, 1), jnp.float32),   # running max
            pltpu.VMEM((block_b, 1, 1), jnp.float32),   # running denominator
            pltpu.VMEM((block_b, 1, H), jnp.float32),   # running weighted sum
        ],
        compiler_params=pltpu.CompilerParams(
            dimension_semantics=("parallel", "arbitrary"),
            vmem_limit_bytes=vmem_limit),
    )(hidden_states, add_feats, w_att_h, w1_h, w1_a, b1, w2_p, b2_p)
    return out[:, :C]


def init_params(key, feat_dim, hidden_dim, num_categories):
    """PyTorch-style (uniform +/- 1/sqrt(fan_in)) init; weights stored (in, out)."""
    ks = jax.random.split(key, 6)

    def lin(kw, kb, fan_in, fan_out):
        bound = 1.0 / jnp.sqrt(float(fan_in))
        w = jax.random.uniform(kw, (fan_in, fan_out), jnp.float32, -bound, bound)
        b = jax.random.uniform(kb, (1, fan_out), jnp.float32, -bound, bound)
        return w, b

    w_att, b_att = lin(ks[0], ks[1], feat_dim, 1)
    w1, b1 = lin(ks[2], ks[3], feat_dim, hidden_dim)
    w2, b2 = lin(ks[4], ks[5], hidden_dim, num_categories)
    return {"w_att": w_att, "b_att": b_att,
            "w1": w1, "b1": b1, "w2": w2, "b2": b2}


def reference_forward(hidden_states, additional_features, params):
    """Pure-JAX reference of the same forward (correctness check)."""
    if additional_features is not None:
        B, S, _ = hidden_states.shape
        add_exp = jnp.broadcast_to(additional_features[:, None, :],
                                   (B, S, additional_features.shape[-1]))
        comb = jnp.concatenate([hidden_states, add_exp], axis=-1)
    else:
        comb = hidden_states
    scores = comb @ params["w_att"] + params["b_att"]          # (B, S, 1)
    weights = jax.nn.softmax(scores, axis=1)
    pooled = jnp.sum(comb * weights, axis=1)                   # (B, D)
    x = jax.nn.relu(pooled @ params["w1"] + params["b1"])
    return x @ params["w2"] + params["b2"]


if __name__ == "__main__":
    # Small stand-in shapes: batch=16, seq=16, encoder hidden=128 (stand-in
    # for DistilBERT's 768, kept a multiple of 128), additional features=4,
    # hidden_dim=128 (module default), num_categories=8.
    B, S, H, A = 16, 16, 128, 4
    HIDDEN_DIM, NUM_CATEGORIES = 128, 8

    key = jax.random.PRNGKey(0)
    k_hs, k_add, k_param = jax.random.split(key, 3)
    hidden_states = jax.random.normal(k_hs, (B, S, H), jnp.float32)
    additional_features = jax.random.normal(k_add, (B, A), jnp.float32)
    params = init_params(k_param, H + A, HIDDEN_DIM, NUM_CATEGORIES)

    with jax.default_matmul_precision("highest"):
        ref = reference_forward(hidden_states, additional_features, params)
        ref_bf16 = reference_forward(
            hidden_states.astype(jnp.bfloat16).astype(jnp.float32),
            additional_features, params)

    # 1) default tiling (batch axis split across >= 2 grid steps for B >= 16)
    logits = jax.block_until_ready(
        st1_classifier_forward(hidden_states, additional_features, params))
    assert logits.shape == (B, NUM_CATEGORIES)
    assert jnp.allclose(logits, ref, atol=1e-2, rtol=1e-2), (
        float(jnp.max(jnp.abs(logits - ref))))

    # 2) explicit sequence tiling -> exercises the online-softmax carry path
    logits_s = jax.block_until_ready(
        st1_classifier_forward(hidden_states, additional_features, params,
                               block_s=8))
    assert jnp.allclose(logits_s, ref, atol=1e-2, rtol=1e-2), (
        float(jnp.max(jnp.abs(logits_s - ref))))

    # 3) bf16 encoder activations (production dtype) -> bf16 MXU path
    logits_b = jax.block_until_ready(
        st1_classifier_forward(hidden_states.astype(jnp.bfloat16),
                               additional_features, params))
    assert jnp.allclose(logits_b, ref_bf16, atol=5e-2, rtol=5e-2), (
        float(jnp.max(jnp.abs(logits_b - ref_bf16))))

    print("KERNEL_OK")
</pallas_src>

<mosaic_0001>
module attributes {stable_mosaic.version = 11 : i64} {
  func.func @_st1_head_kernel(%arg0: i32, %arg1: i32, %arg2: memref<8x16x128xf32, #tpu.memory_space<vmem>>, %arg3: memref<8x4xf32, #tpu.memory_space<vmem>>, %arg4: memref<1x1x128xf32, #tpu.memory_space<vmem>>, %arg5: memref<128x128xf32, #tpu.memory_space<vmem>>, %arg6: memref<4x128xf32, #tpu.memory_space<vmem>>, %arg7: memref<1x128xf32, #tpu.memory_space<vmem>>, %arg8: memref<128x128xf32, #tpu.memory_space<vmem>>, %arg9: memref<1x128xf32, #tpu.memory_space<vmem>>, %arg10: memref<8x128xf32, #tpu.memory_space<vmem>>, %arg11: memref<8x1x1xf32, #tpu.memory_space<vmem>>, %arg12: memref<8x1x1xf32, #tpu.memory_space<vmem>>, %arg13: memref<8x1x128xf32, #tpu.memory_space<vmem>>) attributes {dimension_semantics = [#tpu.dimension_semantics<parallel>, #tpu.dimension_semantics<arbitrary>], iteration_bounds = array<i64: 2, 1>, scalar_prefetch = 0 : i64, scratch_operands = 3 : i64, tpu.core_type = #tpu.core_type<tc>, window_params = [{transform_indices = @transform_0, window_bounds = array<i64: 8, 16, 128>}, {transform_indices = @transform_1, window_bounds = array<i64: 8, 4>}, {pipeline_mode = #tpu.pipeline_mode<synchronous>, transform_indices = @transform_2, window_bounds = array<i64: 1, 1, 128>}, {pipeline_mode = #tpu.pipeline_mode<synchronous>, transform_indices = @transform_3, window_bounds = array<i64: 128, 128>}, {pipeline_mode = #tpu.pipeline_mode<synchronous>, transform_indices = @transform_4, window_bounds = array<i64: 4, 128>}, {pipeline_mode = #tpu.pipeline_mode<synchronous>, transform_indices = @transform_5, window_bounds = array<i64: 1, 128>}, {pipeline_mode = #tpu.pipeline_mode<synchronous>, transform_indices = @transform_6, window_bounds = array<i64: 128, 128>}, {pipeline_mode = #tpu.pipeline_mode<synchronous>, transform_indices = @transform_7, window_bounds = array<i64: 1, 128>}, {transform_indices = @transform_8, window_bounds = array<i64: 8, 128>}]} {
    %c0_i32 = arith.constant 0 : i32
    %0 = arith.cmpi eq, %arg1, %c0_i32 : i32
    %1 = arith.extui %0 : i1 to i32
    %c0_i32_0 = arith.constant 0 : i32
    %2 = arith.cmpi ne, %1, %c0_i32_0 : i32
    scf.if %2 {
      %cst_29 = arith.constant 0xFF800000 : f32
      %33 = vector.broadcast %cst_29 : f32 to vector<8x1x1xf32>
      %c0_30 = arith.constant 0 : index
      %c0_31 = arith.constant 0 : index
      %c0_32 = arith.constant 0 : index
      %34 = vector.load %arg11[%c0_30, %c0_31, %c0_32] : memref<8x1x1xf32, #tpu.memory_space<vmem>>, vector<8x1x1xf32>
      tpu.vector_store %arg11[%c0_30, %c0_31, %c0_32], %33 {strides = array<i32>} : memref<8x1x1xf32, #tpu.memory_space<vmem>>, vector<8x1x1xf32>,
      %cst_33 = arith.constant 0.000000e+00 : f32
      %35 = vector.broadcast %cst_33 : f32 to vector<8x1x1xf32>
      %c0_34 = arith.constant 0 : index
      %c0_35 = arith.constant 0 : index
      %c0_36 = arith.constant 0 : index
      %36 = vector.load %arg12[%c0_34, %c0_35, %c0_36] : memref<8x1x1xf32, #tpu.memory_space<vmem>>, vector<8x1x1xf32>
      tpu.vector_store %arg12[%c0_34, %c0_35, %c0_36], %35 {strides = array<i32>} : memref<8x1x1xf32, #tpu.memory_space<vmem>>, vector<8x1x1xf32>,
      %cst_37 = arith.constant 0.000000e+00 : f32
      %37 = vector.broadcast %cst_37 : f32 to vector<8x1x128xf32>
      %c0_38 = arith.constant 0 : index
      %c0_39 = arith.constant 0 : index
      %c0_40 = arith.constant 0 : index
      %38 = vector.load %arg13[%c0_38, %c0_39, %c0_40] : memref<8x1x128xf32, #tpu.memory_space<vmem>>, vector<8x1x128xf32>
      tpu.vector_store %arg13[%c0_38, %c0_39, %c0_40], %37 {strides = array<i32>} : memref<8x1x128xf32, #tpu.memory_space<vmem>>, vector<8x1x128xf32>,
    } else {
    }
    %c0 = arith.constant 0 : index
    %c0_1 = arith.constant 0 : index
    %c0_2 = arith.constant 0 : index
    %3 = vector.load %arg2[%c0, %c0_1, %c0_2] : memref<8x16x128xf32, #tpu.memory_space<vmem>>, vector<8x16x128xf32>
    %c0_3 = arith.constant 0 : index
    %c0_4 = arith.constant 0 : index
    %c0_5 = arith.constant 0 : index
    %4 = vector.load %arg4[%c0_3, %c0_4, %c0_5] : memref<1x1x128xf32, #tpu.memory_space<vmem>>, vector<1x1x128xf32>
    %5 = vector.shape_cast %4 : vector<1x1x128xf32> to vector<1x1x128xf32>
    %6 = vector.broadcast %5 : vector<1x1x128xf32> to vector<8x1x128xf32>
    "tpu.trace_start"() <{level = 10 : i32, message = "bqd,bkd->bqk"}> : () -> ()
    %cst = arith.constant dense<0.000000e+00> : vector<8x1x16xf32>
    %7 = tpu.matmul %6, %3, %cst {dimension_numbers = #tpu.dot_dimension_numbers<[2], [2], [1], [1], [0, 0, 0, 1, 1, 1], [0], [0]>} : vector<8x1x128xf32>, vector<8x16x128xf32>, vector<8x1x16xf32> -> vector<8x1x16xf32>
    "tpu.trace_stop"() : () -> ()
    %c0_6 = arith.constant 0 : index
    %c0_7 = arith.constant 0 : index
    %c0_8 = arith.constant 0 : index
    %8 = vector.load %arg11[%c0_6, %c0_7, %c0_8] : memref<8x1x1xf32, #tpu.memory_space<vmem>>, vector<8x1x1xf32>
    %cst_9 = arith.constant dense<0xFF800000> : vector<8x1xf32>
    %9 = vector.multi_reduction <maximumf>, %7, %cst_9 [2] : vector<8x1x16xf32> to vector<8x1xf32>
    %10 = vector.shape_cast %9 : vector<8x1xf32> to vector<8x1x1xf32>
    %11 = arith.maximumf %8, %10 : vector<8x1x1xf32>
    %12 = arith.subf %8, %11 : vector<8x1x1xf32>
    %13 = math.exp %12 : vector<8x1x1xf32>
    %14 = vector.broadcast %11 : vector<8x1x1xf32> to vector<8x1x16xf32>
    %15 = arith.subf %7, %14 : vector<8x1x16xf32>
    %16 = math.exp %15 : vector<8x1x16xf32>
    %c0_10 = arith.constant 0 : index
    %c0_11 = arith.constant 0 : index
    %c0_12 = arith.constant 0 : index
    %17 = vector.load %arg12[%c0_10, %c0_11, %c0_12] : memref<8x1x1xf32, #tpu.memory_space<vmem>>, vector<8x1x1xf32>
    %18 = arith.mulf %13, %17 : vector<8x1x1xf32>
    %cst_13 = arith.constant dense<0.000000e+00> : vector<8x1xf32>
    %19 = vector.multi_reduction <add>, %16, %cst_13 [2] : vector<8x1x16xf32> to vector<8x1xf32>
    %20 = vector.shape_cast %19 : vector<8x1xf32> to vector<8x1x1xf32>
    %21 = arith.addf %18, %20 : vector<8x1x1xf32>
    %c0_14 = arith.constant 0 : index
    %c0_15 = arith.constant 0 : index
    %c0_16 = arith.constant 0 : index
    %22 = vector.load %arg12[%c0_14, %c0_15, %c0_16] : memref<8x1x1xf32, #tpu.memory_space<vmem>>, vector<8x1x1xf32>
    tpu.vector_store %arg12[%c0_14, %c0_15, %c0_16], %21 {strides = array<i32>} : memref<8x1x1xf32, #tpu.memory_space<vmem>>, vector<8x1x1xf32>,
    %c0_17 = arith.constant 0 : index
    %c0_18 = arith.constant 0 : index
    %c0_19 = arith.constant 0 : index
    %23 = vector.load %arg13[%c0_17, %c0_18, %c0_19] : memref<8x1x128xf32, #tpu.memory_space<vmem>>, vector<8x1x128xf32>
    %24 = vector.broadcast %13 : vector<8x1x1xf32> to vector<8x1x128xf32>
    %25 = arith.mulf %24, %23 : vector<8x1x128xf32>
    "tpu.trace_start"() <{level = 10 : i32, message = "bqk,bkd->bqd"}> : () -> ()
    %cst_20 = arith.constant dense<0.000000e+00> : vector<8x1x128xf32>
    %26 = tpu.matmul %16, %3, %cst_20 {dimension_numbers = #tpu.dot_dimension_numbers<[2], [1], [1], [2], [0, 0, 0, 1, 1, 2], [0], [0]>} : vector<8x1x16xf32>, vector<8x16x128xf32>, vector<8x1x128xf32> -> vector<8x1x128xf32>
    "tpu.trace_stop"() : () -> ()
    %27 = arith.addf %25, %26 : vector<8x1x128xf32>
    %c0_21 = arith.constant 0 : index
    %c0_22 = arith.constant 0 : index
    %c0_23 = arith.constant 0 : index
    %28 = vector.load %arg13[%c0_21, %c0_22, %c0_23] : memref<8x1x128xf32, #tpu.memory_space<vmem>>, vector<8x1x128xf32>
    tpu.vector_store %arg13[%c0_21, %c0_22, %c0_23], %27 {strides = array<i32>} : memref<8x1x128xf32, #tpu.memory_space<vmem>>, vector<8x1x128xf32>,
    %c0_24 = arith.constant 0 : index
    %c0_25 = arith.constant 0 : index
    %c0_26 = arith.constant 0 : index
    %29 = vector.load %arg11[%c0_24, %c0_25, %c0_26] : memref<8x1x1xf32, #tpu.memory_space<vmem>>, vector<8x1x1xf32>
    tpu.vector_store %arg11[%c0_24, %c0_25, %c0_26], %11 {strides = array<i32>} : memref<8x1x1xf32, #tpu.memory_space<vmem>>, vector<8x1x1xf32>,
    %c0_i32_27 = arith.constant 0 : i32
    %30 = arith.cmpi eq, %arg1, %c0_i32_27 : i32
    %31 = arith.extui %30 : i1 to i32
    %c0_i32_28 = arith.constant 0 : i32
    %32 = arith.cmpi ne, %31, %c0_i32_28 : i32
    scf.if %32 {
      %c0_29 = arith.constant 0 : index
      %c0_30 = arith.constant 0 : index
      %c0_31 = arith.constant 0 : index
      %33 = vector.load %arg13[%c0_29, %c0_30, %c0_31] : memref<8x1x128xf32, #tpu.memory_space<vmem>>, vector<8x1x128xf32>
      %c0_32 = arith.constant 0 : index
      %c0_33 = arith.constant 0 : index
      %c0_34 = arith.constant 0 : index
      %34 = vector.load %arg12[%c0_32, %c0_33, %c0_34] : memref<8x1x1xf32, #tpu.memory_space<vmem>>, vector<8x1x1xf32>
      %35 = vector.broadcast %34 : vector<8x1x1xf32> to vector<8x1x128xf32>
      %36 = arith.divf %33, %35 : vector<8x1x128xf32>
      %cst_35 = arith.constant dense<0.000000e+00> : vector<8x128xf32>
      %37 = vector.multi_reduction <add>, %36, %cst_35 [1] : vector<8x1x128xf32> to vector<8x128xf32>
      %c0_36 = arith.constant 0 : index
      %c0_37 = arith.constant 0 : index
      %38 = vector.load %arg5[%c0_36, %c0_37] : memref<128x128xf32, #tpu.memory_space<vmem>>, vector<128x128xf32>
      %cst_38 = arith.constant dense<0.000000e+00> : vector<8x128xf32>
      %39 = tpu.matmul %37, %38, %cst_38 {dimension_numbers = #tpu.dot_dimension_numbers<[1], [0], [0], [1], [0, 0, 1, 1], [], []>} : vector<8x128xf32>, vector<128x128xf32>, vector<8x128xf32> -> vector<8x128xf32>
      %c0_39 = arith.constant 0 : index
      %c0_40 = arith.constant 0 : index
      %40 = vector.load %arg3[%c0_39, %c0_40] : memref<8x4xf32, #tpu.memory_space<vmem>>, vector<8x4xf32>
      %c0_41 = arith.constant 0 : index
      %c0_42 = arith.constant 0 : index
      %41 = vector.load %arg6[%c0_41, %c0_42] : memref<4x128xf32, #tpu.memory_space<vmem>>, vector<4x128xf32>
      %cst_43 = arith.constant dense<0.000000e+00> : vector<8x128xf32>
      %42 = tpu.matmul %40, %41, %cst_43 {dimension_numbers = #tpu.dot_dimension_numbers<[1], [0], [0], [1], [0, 0, 1, 1], [], []>} : vector<8x4xf32>, vector<4x128xf32>, vector<8x128xf32> -> vector<8x128xf32>
      %43 = arith.addf %39, %42 : vector<8x128xf32>
      %c0_44 = arith.constant 0 : index
      %c0_45 = arith.constant 0 : index
      %44 = vector.load %arg7[%c0_44, %c0_45] : memref<1x128xf32, #tpu.memory_space<vmem>>, vector<1x128xf32>
      %45 = vector.broadcast %44 : vector<1x128xf32> to vector<8x128xf32>
      %46 = arith.addf %43, %45 : vector<8x128xf32>
      %cst_46 = arith.constant 0.000000e+00 : f32
      %47 = vector.broadcast %cst_46 : f32 to vector<8x128xf32>
      %48 = arith.maximumf %46, %47 : vector<8x128xf32>
      %c0_47 = arith.constant 0 : index
      %c0_48 = arith.constant 0 : index
      %49 = vector.load %arg8[%c0_47, %c0_48] : memref<128x128xf32, #tpu.memory_space<vmem>>, vector<128x128xf32>
      %cst_49 = arith.constant dense<0.000000e+00> : vector<8x128xf32>
      %50 = tpu.matmul %48, %49, %cst_49 {dimension_numbers = #tpu.dot_dimension_numbers<[1], [0], [0], [1], [0, 0, 1, 1], [], []>} : vector<8x128xf32>, vector<128x128xf32>, vector<8x128xf32> -> vector<8x128xf32>
      %c0_50 = arith.constant 0 : index
      %c0_51 = arith.constant 0 : index
      %51 = vector.load %arg9[%c0_50, %c0_51] : memref<1x128xf32, #tpu.memory_space<vmem>>, vector<1x128xf32>
      %52 = vector.broadcast %51 : vector<1x128xf32> to vector<8x128xf32>
      %53 = arith.addf %50, %52 : vector<8x128xf32>
      %c0_52 = arith.constant 0 : index
      %c0_53 = arith.constant 0 : index
      %54 = vector.load %arg10[%c0_52, %c0_53] : memref<8x128xf32, #tpu.memory_space<vmem>>, vector<8x128xf32>
      tpu.vector_store %arg10[%c0_52, %c0_53], %53 {strides = array<i32>} : memref<8x128xf32, #tpu.memory_space<vmem>>, vector<8x128xf32>,
    } else {
    }
    return
  }
  func.func @transform_0(%arg0: i32, %arg1: i32) -> (i32, i32, i32) {
    %c0_i32 = arith.constant 0 : i32
    %c0_i32_0 = arith.constant 0 : i32
    return %arg0, %arg1, %c0_i32 : i32, i32, i32
  }
  func.func @transform_1(%arg0: i32, %arg1: i32) -> (i32, i32) {
    %c0_i32 = arith.constant 0 : i32
    %c0_i32_0 = arith.constant 0 : i32
    return %arg0, %c0_i32 : i32, i32
  }
  func.func @transform_2(%arg0: i32, %arg1: i32) -> (i32, i32, i32) {
    %c0_i32 = arith.constant 0 : i32
    %c0_i32_0 = arith.constant 0 : i32
    %c0_i32_1 = arith.constant 0 : i32
    %c0_i32_2 = arith.constant 0 : i32
    return %c0_i32, %c0_i32_0, %c0_i32_1 : i32, i32, i32
  }
  func.func @transform_3(%arg0: i32, %arg1: i32) -> (i32, i32) {
    %c0_i32 = arith.constant 0 : i32
    %c0_i32_0 = arith.constant 0 : i32
    %c0_i32_1 = arith.constant 0 : i32
    return %c0_i32, %c0_i32_0 : i32, i32
  }
  func.func @transform_4(%arg0: i32, %arg1: i32) -> (i32, i32) {
    %c0_i32 = arith.constant 0 : i32
    %c0_i32_0 = arith.constant 0 : i32
    %c0_i32_1 = arith.constant 0 : i32
    return %c0_i32, %c0_i32_0 : i32, i32
  }
  func.func @transform_5(%arg0: i32, %arg1: i32) -> (i32, i32) {
    %c0_i32 = arith.constant 0 : i32
    %c0_i32_0 = arith.constant 0 : i32
    %c0_i32_1 = arith.constant 0 : i32
    return %c0_i32, %c0_i32_0 : i32, i32
  }
  func.func @transform_6(%arg0: i32, %arg1: i32) -> (i32, i32) {
    %c0_i32 = arith.constant 0 : i32
    %c0_i32_0 = arith.constant 0 : i32
    %c0_i32_1 = arith.constant 0 : i32
    return %c0_i32, %c0_i32_0 : i32, i32
  }
  func.func @transform_7(%arg0: i32, %arg1: i32) -> (i32, i32) {
    %c0_i32 = arith.constant 0 : i32
    %c0_i32_0 = arith.constant 0 : i32
    %c0_i32_1 = arith.constant 0 : i32
    return %c0_i32, %c0_i32_0 : i32, i32
  }
  func.func @transform_8(%arg0: i32, %arg1: i32) -> (i32, i32) {
    %c0_i32 = arith.constant 0 : i32
    %c0_i32_0 = arith.constant 0 : i32
    return %arg0, %c0_i32 : i32, i32
  }
}

</mosaic_0001>

<bundles_post_ra>
// kernel: tpu_custom_call.1
= control target key start
LH: loop header
LB: loop body
LE: loop exit
PB: predicated region body
PF: predicated region fallthrough
CT: control target
= control target key end

     0   :  { %s3755_s0 = inlined_call_operand.hbm [shape: f32[16,16,128], index: 0, kind: input, shape index: {}]   ;;  %s3756_s1 = inlined_call_operand.vmem [shape: f32[16,4], index: 1, kind: input, shape index: {}]   ;;  %s3757_s2 = inlined_call_operand.vmem [shape: f32[1,1,128], index: 2, kind: input, shape index: {}]   ;;  %s3758_s3 = inlined_call_operand.hbm [shape: f32[128,128], index: 3, kind: input, shape index: {}]   ;;  %s3759_s4 = inlined_call_operand.vmem [shape: f32[4,128], index: 4, kind: input, shape index: {}]   ;;  %s3760_s5 = inlined_call_operand.vmem [shape: f32[1,128], index: 5, kind: input, shape index: {}]   ;;  %s3761_s6 = inlined_call_operand.hbm [shape: f32[128,128], index: 6, kind: input, shape index: {}]   ;;  %s3762_s7 = inlined_call_operand.vmem [shape: f32[1,128], index: 7, kind: input, shape index: {}]   ;;  %s3763_s8 = inlined_call_operand.hbm [shape: f32[16,128], index: 8, kind: output, shape index: {}]  }
   0x1   :  { %3768 = sst [smem:[#allocation17_spill]] %s3758_s3 }
   0x2   :  { %3769 = sst [smem:[#allocation18_spill]] %s3761_s6 }
   0x3   :  { %13 = vsyncpa [#allocation6], 0 }
   0x4   :  { %15 = vsyncpa [#allocation6 + $0x1], 0 }
   0x5   :  { %16 = vsyncpa [#allocation9], 0 }
   0x6   :  { %17 = vsyncpa [#allocation7], 0 }
   0x7   :  { %19 = vsyncpa [#allocation7 + $0x1], 0  ;;  %s3145_s27 = smov 0   ;;  %s3147_s28 = smov 0  }
   0x8   :  { %s3149_s29 = smov 0   ;;  %s3151_s30 = smov 0  }
   0x9   :  { %s3153_s9 = smov 0   ;;  %s3155_s10 = smov 0  }
   0xa LB: > { %3770 = sst [smem:[#allocation15_spill]] %s3083_s9  ;;  %s2478_s11 = sadd.s32 4294967295, %s3087_s10   ;;  %s3087_s10 = sphi %s3155_s10, %s25_s10   ;;  %s3083_s9 = sphi %s3153_s9, %s3787_s9   ;;  %s3079_s30 = sphi %s3151_s30, %s3786_s30   ;;  %s3075_s29 = sphi %s3149_s29, %s3790_s29   ;;  %s3071_s28 = sphi %s3147_s28, %s3789_s28   ;;  %s3067_s27 = sphi %s3145_s27, %s3788_s27  }
   0xb   : > { %s2479_s12 = sadd.s32 4294967294, %s3087_s10   ;;  %p59_p0 = scmp.ne.s32.totalorder %s3071_s28, %s3067_s27 }
   0xc   : > { %p3179_p1 = scmp.eq.s32.totalorder %s2478_s11, 0  ;;  %p3183_p2 = scmp.eq.s32.totalorder %s2478_s11, 1 }
   0xd   : > { %p241_p3 = scmp.eq.s32.totalorder %s2479_s12, 1  ;;  %p2480_p5 = scmp.ge.s32.totalorder %s3087_s10, 1 }
   0xe   : > { %p3189_p4 = por %p3179_p1, %p59_p0  ;;  %p248_p7 = scmp.lt.s32.totalorder %s3087_s10, 3 }
   0xf   : > { %p3194_p6 = por %p241_p3, %p59_p0  ;;  %s3089_s18 = smov [#allocation8]  }
  0x10   : > { %p3199_p8 = pnand %p2480_p5, %p248_p7  ;;  %s263_s19 = sshll.u32 %s3089_s18, 4  ;;  %s264_s19 = int_to_ptr.vmem [resolvable:$true] %s263_s19 }
  0x11   : > { %s3774_s16 = scalar_select %p3194_p6, 1, 0 }
  0x12   : > { %p2795_p9 = pneg %p3199_p8  ;;  %s3090_s21 = smov [#allocation10]  }
  0x13   : > { %s282_s22 = sshll.u32 %s3090_s21, 4  ;;  %s2934_s23 = scalar_lea.vmem %s264_s19, 2048  ;;  %s283_s22 = int_to_ptr.vmem [resolvable:$true] %s282_s22 }
  0x14   : > { %p3208_p11 = pnand %p2795_p9, %p3179_p1  ;;  %p2935_p13 = scmp.ne.s32.totalorder %s264_s19, %s2934_s23 }
  0x15   : > { %p2942_p5 = scmp.lt.s32.totalorder %s264_s19, %s264_s19  ;;  %p2943_p7 = scmp.lt.s32.totalorder %s2934_s23, %s2934_s23 }
  0x16   : > { %p2925_p12 = pneg %p3208_p11 }
  0x17   : > { %p2944_p10 = por %p2943_p7, %p2942_p5 }
  0x18   : > { %p2937_p0 = pnand %p2935_p13, %p2925_p12 }
  0x1a   : > { %p2938_p3 = pneg %p2937_p0 }
  0x1c   : > { %p2945_p9 = pnand %p2944_p10, %p2938_p3 }
  0x1e   : > { %2948 = shalt.err (!%p2945_p9)
}
  0x1f   : > { %s3764_s24 = smov 128   ;;  %s3765_s25 = smov 8  }
  0x20   : > { %s3777_s3 = sld [smem:[#allocation17_spill]]  ;;  %s2960_s12 = scalar_lea.vmem %s283_s22, 2048 }
  0x21   : > { %p2961_p13 = scmp.ne.s32.totalorder %s283_s22, %s2960_s12  ;;  %p2968_p10 = scmp.lt.s32.totalorder %s283_s22, %s283_s22 }
  0x22   : > { %p2969_p3 = scmp.lt.s32.totalorder %s2960_s12, %s2960_s12 }
  0x23   : > { %p2963_p0 = pnand %p2961_p13, %p2925_p12 }
  0x24   : > { %p2970_p7 = por %p2969_p3, %p2968_p10 }
  0x25   : > { %p2964_p5 = pneg %p2963_p0 }
  0x26   : > { %2798 = dma.hbm_to_vmem [thread:$0]  (!%p3208_p11), %s3777_s3, 2048, %s264_s19, [#allocation9], %s3764_s24, %s3764_s24, %s3765_s25  }
  0x27   : > { %p2971_p9 = pnand %p2970_p7, %p2964_p5 }
  0x29   : > { %2974 = shalt.err (!%p2971_p9)
}
  0x2a   : > { %s3778_s6 = sld [smem:[#allocation18_spill]]  ;;  %s37_s19 = sadd.s32 1, %s3083_s9 }
  0x2b   : > { %s46_s20 = sadd.s32 1, %s3075_s29  ;;  %p39_p12 = scmp.ge.s32.totalorder %s37_s19, 2 }
  0x2c   : > { %p53_p13 = scmp.ne.s32.totalorder %s3075_s29, %s3071_s28  ;;  %p54_p0 = scmp.eq.s32.totalorder %s3087_s10, 0 }
  0x2d   : > { %p2812_p5 = scmp.lt.s32.totalorder %s3087_s10, 2  ;;  %s3792_s19 = smov (%p39_p12, %s37_s19), 0 }
  0x2e   : > { %3779 = sst [smem:[#allocation16_spill]] %s3792_s19  ;;  %p55_p10 = por %p54_p0, %p53_p13 }
  0x2f   : > { %p3246_p3 = por %p3183_p2, %p53_p13  ;;  %s41_s26 = ssub.s32 %s3083_s9, %s3792_s19 }
  0x30   : > { %2801 = dma.hbm_to_vmem [thread:$0]  (!%p3208_p11), %s3778_s6, 2048, %s283_s22, [#allocation9], %s3764_s24, %s3764_s24, %s3765_s25  }
  0x31   : > { %s299_s11 = sand.u32 1, %s3075_s29   ;;  %p44_p7 = scmp.eq.s32.totalorder %s41_s26, 0 }
  0x32   : > { %s2484_s22 = sshll.u32 %s299_s11, 7  ;;  %s2511_s12 = sshll.u32 %s3083_s9, 11 }
  0x33   : > { %s3255_s18 = scalar_select %p44_p7, %s3075_s29, %s46_s20  }
  0x34   : > { %s312_s25 = scalar_lea.hbm %s3755_s0, %s2511_s12  ;;  %s303_s3 = scalar_lea.vmem [#allocation5], %s2484_s22 }
  0x35   : > { %s313_s6 = sshll.u32 %s303_s3, 4  ;;  %p3262_p11 = pnand %p2812_p5, %p55_p10  ;;  %s314_s6 = int_to_ptr.vmem [resolvable:$true] %s313_s6 }
  0x36   : > { %s300_s19 = scalar_lea.sflag [#allocation6], %s299_s11  ;;  %s2988_s26 = scalar_lea.vmem %s314_s6, 2048 }
  0x37   : > { %p2977_p2 = pneg %p3262_p11  ;;  %p2989_p9 = scmp.ne.s32.totalorder %s314_s6, %s2988_s26 }
  0x38   : > { %s3093_s20 = smov [#allocation5]  }
  0x39   : > { %p2991_p12 = pnand %p2989_p9, %p2977_p2  ;;  %s2993_s9 = sshll.u32 %s3093_s20, 4  ;;  %s2994_s9 = int_to_ptr.vmem [resolvable:$false] %s2993_s9 }
  0x3a   : > { %s2995_s24 = scalar_lea.vmem %s2994_s9, 4096  ;;  %p2996_p0 = scmp.lt.s32.totalorder %s314_s6, %s2994_s9 }
  0x3b   : > { %p2992_p13 = pneg %p2991_p12  ;;  %p2997_p7 = scmp.lt.s32.totalorder %s2995_s24, %s2988_s26 }
  0x3d   : > { %p2998_p6 = por %p2997_p7, %p2996_p0 }
  0x3f   : > { %p2999_p5 = pnand %p2998_p6, %p2992_p13 }
  0x41   : > { %3002 = shalt.err (!%p2999_p5)
}
  0x42   : > { %s3782_s3 = smov 8   ;;  %s3783_s22 = smov 128  }
  0x43   : > { %2805 = dma.hbm_to_vmem [thread:$0]  (!%p3262_p11), %s312_s25, 2048, %s314_s6, %s300_s19, %s3783_s22, %s3783_s22, %s3782_s3  }
  0x44   : > { %332 = sbr.rel (%p3199_p8) target bundleno = 1302 (0x516), region = 52  ;;  %s3276_s11 = sand.u32 (!%p3199_p8), 1, %s3071_s28  }
  0x45   : > { %s2489_s9 = sshll.u32 (!%p3199_p8), %s3276_s11, 7  ;;  %s335_s12 = scalar_lea.sflag (!%p3199_p8), [#allocation6], %s3276_s11 }
  0x46   : > { %s3280_s21 = scalar_lea.vmem (!%p3199_p8), [#allocation5], %s2489_s9 }
  0x49   : > { %3054 = dma.done.wait (%p3189_p4), %s335_s12, 2048  }
  0x4a   : > { %3056 = vsyncadd (%p3189_p4), %s335_s12, 4294965248 }
  0x4b   : > { %3058 = dma.done.wait (%p3179_p1), [#allocation9], 4096  }
  0x4c   : > { %3060 = vsyncadd (%p3179_p1), [#allocation9], 4294963200  ;;  %v3094_v0 = vmov 0.0   ;;  %vm3095_vm0 = vmmov 0   ;;  %v419_v1 = vld [vmem:[%s3280_s21 + $0x8] sm:$0xff]  ;;  %v3306_v2 = vld [vmem:[%s3280_s21 + $0x18] sm:$0xff] }
  0x4d   : > { %2596 = vmatprep.subr.mxu0 %v3094_v0  ;;  %410 = vst [vmem:[#allocation4] sm:$0x1] %v3094_v0  ;;  %411 = vst [vmem:[#allocation4 + $0x1] sm:$0x1] %v3094_v0  ;;  %2603 = vmatprep.subr.mxu1 %v3094_v0  ;;  %v418_v3 = vld [vmem:[%s3280_s21] sm:$0xff]  ;;  %v420_v4 = vld [vmem:[%s3280_s21 + $0x10] sm:$0xff] }
  0x4e   : > { %412 = vst [vmem:[#allocation4 + $0x2] sm:$0x1] %v3094_v0  ;;  %413 = vst [vmem:[#allocation4 + $0x3] sm:$0x1] %v3094_v0  ;;  %2600 = vmatprep.mubr.msk.f32.mxu0 %vm3095_vm0, %v3094_v0  ;;  %2607 = vmatprep.mubr.msk.f32.mxu1 %vm3095_vm0, %v3094_v0  ;;  %v434_v5 = vld [vmem:[%s3757_s2] sm:$0x1] }
  0x4f   : > { %414 = vst [vmem:[#allocation4 + $0x4] sm:$0x1] %v3094_v0  ;;  %415 = vst [vmem:[#allocation4 + $0x5] sm:$0x1] %v3094_v0  ;;  %2597 = vmatpush3.xpose.msra.mxu0 %v419_v1  ;;  %2604 = vmatpush3.xpose.msra.mxu1 %v3306_v2  ;;  %v3318_v6 = vld [vmem:[%s3280_s21 + $0x28] sm:$0xff]  ;;  %v3322_v7 = vld [vmem:[%s3280_s21 + $0x38] sm:$0xff] }
  0x50   : > { %416 = vst [vmem:[#allocation4 + $0x6] sm:$0x1] %v3094_v0  ;;  %417 = vst [vmem:[#allocation4 + $0x7] sm:$0x1] %v3094_v0  ;;  %2598 = vmatprep.subr.mxu0 %v3094_v0  ;;  %2605 = vmatprep.subr.mxu1 %v3094_v0  ;;  %v3328_v8 = vld [vmem:[%s3280_s21 + $0x20] sm:$0xff]  ;;  %v3332_v9 = vld [vmem:[%s3280_s21 + $0x30] sm:$0xff] }
  0x51   : > { %v3342_v10 = vld [vmem:[%s3280_s21 + $0x48] sm:$0xff]  ;;  %v3346_v11 = vld [vmem:[%s3280_s21 + $0x58] sm:$0xff]  ;;  %v3352_v12 = vld [vmem:[%s3280_s21 + $0x40] sm:$0xff]  ;;  %vm393_vm1 = vcmask 0   ;;  %v3096_v18 = vmov -inf   ;;  %vm1003_vm2 = vcmask 122880  }
  0x52   : > { %v3356_v13 = vld [vmem:[%s3280_s21 + $0x50] sm:$0xff]  ;;  %v3366_v14 = vld [vmem:[%s3280_s21 + $0x68] sm:$0xff]  ;;  %v3370_v15 = vld [vmem:[%s3280_s21 + $0x78] sm:$0xff]  ;;  %394 = vst.msk [vmem:[#allocation2] sm:$0x1] %vm393_vm1, %v3096_v18  ;;  %v3097_v31 = vmov 0  }
  0x53   : > { %2599 = vmatpush3.xpose.msra.mxu0 %v418_v3  ;;  %2606 = vmatpush3.xpose.msra.mxu1 %v420_v4  ;;  %v3376_v16 = vld [vmem:[%s3280_s21 + $0x60] sm:$0xff]  ;;  %v3380_v17 = vld [vmem:[%s3280_s21 + $0x70] sm:$0xff]  ;;  %395 = vst.msk [vmem:[#allocation2 + $0x1] sm:$0x1] %vm393_vm1, %v3096_v18  ;;  %396 = vst.msk [vmem:[#allocation2 + $0x2] sm:$0x1] %vm393_vm1, %v3096_v18 }
  0x54   : > { %2610 = vmatprep.subr.mxu0 %v3094_v0  ;;  %2617 = vmatprep.subr.mxu1 %v3094_v0  ;;  %397 = vst.msk [vmem:[#allocation2 + $0x3] sm:$0x1] %vm393_vm1, %v3096_v18  ;;  %398 = vst.msk [vmem:[#allocation2 + $0x4] sm:$0x1] %vm393_vm1, %v3096_v18  ;;  %vm1301_vm3 = vcmask 130048   ;;  %vm2047_vm4 = vcmask 1043456  }
  0x55   : > { %399 = vst.msk [vmem:[#allocation2 + $0x5] sm:$0x1] %vm393_vm1, %v3096_v18  ;;  %400 = vst.msk [vmem:[#allocation2 + $0x6] sm:$0x1] %vm393_vm1, %v3096_v18  ;;  %2873 = vset.pattern.permute.xlu0 %v3097_v31  ;;  %2874 = vset.pattern.permute.xlu1 %v3097_v31  ;;  %p385_p1 = scmp.lt.s32.totalorder %s3079_s30, 1  ;;  %vm2043_vm5 = vcmask 31744  }
  0x56   : > { %2601 = vmatmul.mubr.f32.vlgmr.msra.gmra.mxu0 %v434_v5  ;;  %2608 = vmatmul.mubr.f32.vlgmr.msra.gmra.mxu1 %v434_v5  ;;  %401 = vst.msk [vmem:[#allocation2 + $0x7] sm:$0x1] %vm393_vm1, %v3096_v18  ;;  %402 = vst.msk [vmem:[#allocation3] sm:$0x1] %vm393_vm1, %v3094_v0  ;;  %s2492_s22 = sshll.u32 %s3276_s11, 3  ;;  %s2507_s21 = sshll.u32 %s3079_s30, 7 }
  0x57   : > { %2611 = vmatpush3.xpose.msra.mxu0 %v3318_v6  ;;  %2618 = vmatpush3.xpose.msra.mxu1 %v3322_v7  ;;  %403 = vst.msk [vmem:[#allocation3 + $0x1] sm:$0x1] %vm393_vm1, %v3094_v0  ;;  %404 = vst.msk [vmem:[#allocation3 + $0x2] sm:$0x1] %vm393_vm1, %v3094_v0  ;;  %s386_s25 = scalar_select %p385_p1, %s3079_s30, 1 }
  0x58   : > { %2612 = vmatprep.subr.mxu0 %v3094_v0  ;;  %2619 = vmatprep.subr.mxu1 %v3094_v0  ;;  %405 = vst.msk [vmem:[#allocation3 + $0x3] sm:$0x1] %vm393_vm1, %v3094_v0  ;;  %406 = vst.msk [vmem:[#allocation3 + $0x4] sm:$0x1] %vm393_vm1, %v3094_v0  ;;  %s382_s6 = scalar_lea.vmem [#allocation11], %s2492_s22  ;;  %s3099_s26 = smov [#allocation11]  }
  0x59   : > { %2614 = vmatprep.mubr.msk.f32.mxu0 %vm3095_vm0, %v3094_v0  ;;  %2621 = vmatprep.mubr.msk.f32.mxu1 %vm3095_vm0, %v3094_v0  ;;  %407 = vst.msk [vmem:[#allocation3 + $0x5] sm:$0x1] %vm393_vm1, %v3094_v0  ;;  %408 = vst.msk [vmem:[#allocation3 + $0x6] sm:$0x1] %vm393_vm1, %v3094_v0  ;;  %v3455_v44 = vld [vmem:[#allocation2] sm:$0x1] }
  0x5a   : > { %409 = vst.msk [vmem:[#allocation3 + $0x7] sm:$0x1] %vm393_vm1, %v3094_v0  ;;  %v3460_v47 = vld [vmem:[#allocation2 + $0x1] sm:$0x1]  ;;  %v3470_v51 = vld [vmem:[#allocation2 + $0x2] sm:$0x1] }
  0x5b   : > { %2613 = vmatpush3.xpose.msra.mxu0 %v3328_v8  ;;  %2620 = vmatpush3.xpose.msra.mxu1 %v3332_v9  ;;  %v3480_v55 = vld [vmem:[#allocation2 + $0x3] sm:$0x1]  ;;  %v3490_v59 = vld [vmem:[#allocation2 + $0x4] sm:$0x1]  ;;  %s2493_s19 = sshll.u32 %s386_s25, 3  ;;  %s2366_s13 = sshll.u32 %s382_s6, 4  ;;  %s2367_s13 = int_to_ptr.vmem [resolvable:$true] %s2366_s13 }
  0x5c   : > { %2624 = vmatprep.subr.mxu0 %v3094_v0  ;;  %2631 = vmatprep.subr.mxu1 %v3094_v0  ;;  %v3492_v60 = vld [vmem:[#allocation2 + $0x5] sm:$0x1]  ;;  %s388_s20 = scalar_lea.vmem %s3756_s1, %s2493_s19  ;;  %s3713_s25 = scalar_lea.hbm %s3763_s8, %s2507_s21 }
  0x5d   : > { %v3516_v18 = vld [vmem:[#allocation2 + $0x7] sm:$0x1]  ;;  %s2353_s19 = scalar_lea.sflag [#allocation7], %s3276_s11  ;;  %s3003_s14 = scalar_lea.vmem %s2367_s13, 128 }
  0x5e   : > { %2615 = vmatmul.mubr.f32.vlgmr.msra.gmra.mxu0 %v434_v5  ;;  %2622 = vmatmul.mubr.f32.vlgmr.msra.gmra.mxu1 %v434_v5  ;;  %p3004_p4 = scmp.ne.s32.totalorder %s2367_s13, %s3003_s14  ;;  %s3007_s30 = sshll.u32 %s3099_s26, 4  ;;  %s3008_s30 = int_to_ptr.vmem [resolvable:$false] %s3007_s30 }
  0x5f   : > { %2625 = vmatpush3.xpose.msra.mxu0 %v3342_v10  ;;  %2632 = vmatpush3.xpose.msra.mxu1 %v3346_v11  ;;  %p3010_p10 = scmp.lt.s32.totalorder %s2367_s13, %s3008_s30 }
  0x60   : > { %2626 = vmatprep.subr.mxu0 %v3094_v0  ;;  %2633 = vmatprep.subr.mxu1 %v3094_v0  ;;  %p3005_p6 = pnand %p3004_p4, %p3246_p3 }
  0x61   : > { %2628 = vmatprep.mubr.msk.f32.mxu0 %vm3095_vm0, %v3094_v0  ;;  %2635 = vmatprep.mubr.msk.f32.mxu1 %vm3095_vm0, %v3094_v0 }
  0x62   : > { %p3006_p8 = pneg %p3005_p6 }
  0x63   : > { %2627 = vmatpush3.xpose.msra.mxu0 %v3352_v12  ;;  %2634 = vmatpush3.xpose.msra.mxu1 %v3356_v13 }
  0x64   : > { %2638 = vmatprep.subr.mxu0 %v3094_v0  ;;  %2645 = vmatprep.subr.mxu1 %v3094_v0 }
  0x66   : > { %2629 = vmatmul.mubr.f32.vlgmr.msra.gmra.mxu0 %v434_v5  ;;  %2636 = vmatmul.mubr.f32.vlgmr.msra.gmra.mxu1 %v434_v5 }
  0x67   : > { %2639 = vmatpush3.xpose.msra.mxu0 %v3366_v14  ;;  %2646 = vmatpush3.xpose.msra.mxu1 %v3370_v15 }
  0x68   : > { %2640 = vmatprep.subr.mxu0 %v3094_v0  ;;  %2647 = vmatprep.subr.mxu1 %v3094_v0 }
  0x69   : > { %2642 = vmatprep.mubr.msk.f32.mxu0 %vm3095_vm0, %v3094_v0  ;;  %2649 = vmatprep.mubr.msk.f32.mxu1 %vm3095_vm0, %v3094_v0 }
  0x6b   : > { %2641 = vmatpush3.xpose.msra.mxu0 %v3376_v16  ;;  %2648 = vmatpush3.xpose.msra.mxu1 %v3380_v17 }
  0x6c   : > { %2652 = vmatprep.subr.mxu0 %v3094_v0  ;;  %2659 = vmatprep.subr.mxu1 %v3094_v0 }
  0x6e   : > { %2643 = vmatmul.mubr.f32.vlgmr.msra.gmra.mxu0 %v434_v5  ;;  %2650 = vmatmul.mubr.f32.vlgmr.msra.gmra.mxu1 %v434_v5  ;;  %v3514_v5 = vld [vmem:[#allocation2 + $0x6] sm:$0x1] }
  0x6f   : > { %2653 = vmatpush3.msra.mxu0 %v419_v1  ;;  %2656 = vmatprep.mubr.msk.f32.mxu0 %vm3095_vm0, %v3094_v0 }
  0x70   : > { %2654 = vmatprep.subr.mxu0 %v3094_v0  ;;  %2660 = vmatpush3.msra.mxu1 %v3306_v2 }
  0x71   : > { %2655 = vmatpush3.msra.mxu0 %v418_v3  ;;  %2661 = vmatprep.subr.mxu1 %v3094_v0 }
  0x72   : > { %2662 = vmatpush3.msra.mxu1 %v420_v4  ;;  %2663 = vmatprep.mubr.msk.f32.mxu1 %vm3095_vm0, %v3094_v0 }
  0x73   : > { %2666 = vmatprep.subr.mxu0 %v3094_v0  ;;  %2673 = vmatprep.subr.mxu1 %v3094_v0 }
 0x116   : > { %v3423_v19 = vpop.f32.mrf.mxu0  ;;  %v3425_v20 = vpop.f32.mrf.mxu1 }
 0x117   : > { %v1004_v21 = vsel %vm1003_vm2, %v3423_v19, -inf  ;;  %v1007_v24 = vsel %vm1003_vm2, %v3425_v20, -inf }
 0x118   : > { %1005 = vmax.xlane.f32.xlu0 %v1004_v21  ;;  %v2602_v22 = vpop.f32.mrf.mxu0  ;;  %v2609_v23 = vpop.f32.mrf.mxu1 }
 0x11c   : > { %1008 = vmax.xlane.f32.xlu0 %v1007_v24 }
 0x11e   : > { %v3431_v25 = vpop.f32.mrf.mxu0  ;;  %v3433_v26 = vpop.f32.mrf.mxu1 }
 0x11f   : > { %v1010_v27 = vsel %vm1003_vm2, %v3431_v25, -inf  ;;  %v1013_v30 = vsel %vm1003_vm2, %v3433_v26, -inf }
 0x120   : > { %1011 = vmax.xlane.f32.xlu1 %v1010_v27  ;;  %v2616_v28 = vpop.f32.mrf.mxu0  ;;  %v2623_v29 = vpop.f32.mrf.mxu1 }
 0x121   : > { %v1065_v29 = vlaneseq }
 0x124   : > { %1014 = vmax.xlane.f32.xlu1 %v1013_v30  ;;  %v3535_v30 = vshrl.u32 %v1065_v29, 7 }
 0x126   : > { %v3439_v32 = vpop.f32.mrf.mxu0  ;;  %v3441_v33 = vpop.f32.mrf.mxu1  ;;  %v3538_v31 = vsub.s32 0, %v3535_v30 }
 0x127   : > { %v1016_v34 = vsel %vm1003_vm2, %v3439_v32, -inf  ;;  %v1019_v35 = vsel %vm1003_vm2, %v3441_v33, -inf }
 0x128   : > { %1017 = vmax.xlane.f32.xlu0 %v1016_v34  ;;  %v2630_v36 = vpop.f32.mrf.mxu0  ;;  %v2637_v37 = vpop.f32.mrf.mxu1  ;;  %1020 = vmax.xlane.f32.xlu1 %v1019_v35 }
 0x12e   : > { %v3447_v38 = vpop.f32.mrf.mxu0  ;;  %v3449_v39 = vpop.f32.mrf.mxu1 }
 0x12f   : > { %v1022_v40 = vsel %vm1003_vm2, %v3447_v38, -inf  ;;  %v1025_v41 = vsel %vm1003_vm2, %v3449_v39, -inf }
 0x130   : > { %1023 = vmax.xlane.f32.xlu0 %v1022_v40  ;;  %v2644_v42 = vpop.f32.mrf.mxu0  ;;  %v2651_v43 = vpop.f32.mrf.mxu1  ;;  %1026 = vmax.xlane.f32.xlu1 %v1025_v41 }
 0x1a1   : > { %v1006_v45 = vpop.xlane.xlu0 %1005 }
 0x1a2   : > { %v3458_v46 = vmax.f32 %v3455_v44, %v1006_v45 }
 0x1a4   : > { %v1036_v48 = vsub.f32 %v3455_v44, %v3458_v46  ;;  %1902 = vst.msk [vmem:[#allocation2] sm:$0x1] %vm393_vm1, %v3458_v46  ;;  %1062 = vperm.xlu0 %2873, %v3458_v46  }
 0x1a5   : > { %v1009_v49 = vpop.xlane.xlu0 %1008 }
 0x1a6   : > { %v3468_v50 = vmax.f32 %v3460_v47, %v1009_v49 }
 0x1a8   : > { %v1037_v52 = vsub.f32 %v3460_v47, %v3468_v50  ;;  %1903 = vst.msk [vmem:[#allocation2 + $0x1] sm:$0x1] %vm393_vm1, %v3468_v50  ;;  %1071 = vperm.xlu1 %2874, %v3468_v50  }
 0x1a9   : > { %v1012_v53 = vpop.xlane.xlu1 %1011 }
 0x1aa   : > { %v3478_v54 = vmax.f32 %v3470_v51, %v1012_v53 }
 0x1ac   : > { %v1038_v56 = vsub.f32 %v3470_v51, %v3478_v54  ;;  %1904 = vst.msk [vmem:[#allocation2 + $0x2] sm:$0x1] %vm393_vm1, %v3478_v54  ;;  %1080 = vperm.xlu1 %2874, %v3478_v54  }
 0x1ad   : > { %v1015_v57 = vpop.xlane.xlu1 %1014 }
 0x1ae   : > { %v3488_v58 = vmax.f32 %v3480_v55, %v1015_v57 }
 0x1b0   : > { %v1039_v61 = vsub.f32 %v3480_v55, %v3488_v58  ;;  %1905 = vst.msk [vmem:[#allocation2 + $0x3] sm:$0x1] %vm393_vm1, %v3488_v58  ;;  %1089 = vperm.xlu1 %2874, %v3488_v58  }
 0x1b1   : > { %v1018_v62 = vpop.xlane.xlu0 %1017  ;;  %v1021_v63 = vpop.xlane.xlu1 %1020 }
 0x1b2   : > { %v3500_v1 = vmax.f32 %v3490_v59, %v1018_v62  ;;  %v3503_v2 = vmax.f32 %v3492_v60, %v1021_v63  ;;  %v1050_v44 = vmul.f32 1.442695, %v1039_v61  ;;  %v1157_v61 = vld [vmem:[#allocation3 + $0x1] sm:$0x1] }
 0x1b4   : > { %v1040_v3 = vsub.f32 %v3490_v59, %v3500_v1  ;;  %1906 = vst.msk [vmem:[#allocation2 + $0x4] sm:$0x1] %vm393_vm1, %v3500_v1  ;;  %1098 = vperm.xlu1 %2874, %v3500_v1   ;;  %v1041_v4 = vsub.f32 %v3492_v60, %v3503_v2  ;;  %1907 = vst.msk [vmem:[#allocation2 + $0x5] sm:$0x1] %vm393_vm1, %v3503_v2 }
 0x1b6   : > { %v1052_v46 = vmul.f32 1.442695, %v1040_v3  ;;  %v1054_v47 = vmul.f32 1.442695, %v1041_v4  ;;  %v1158_v4 = vld [vmem:[#allocation3 + $0x2] sm:$0x1] }
 0x1b8   : > { %1107 = vperm.xlu1 %2874, %v3503_v2  }
 0x1b9   : > { %v1024_v21 = vpop.xlane.xlu0 %1023  ;;  %v1027_v22 = vpop.xlane.xlu1 %1026 }
 0x1ba   : > { %v3520_v23 = vmax.f32 %v3514_v5, %v1024_v21  ;;  %v3523_v24 = vmax.f32 %v3516_v18, %v1027_v22 }
 0x1bc   : > { %v1042_v27 = vsub.f32 %v3514_v5, %v3520_v23  ;;  %1908 = vst.msk [vmem:[#allocation2 + $0x6] sm:$0x1] %vm393_vm1, %v3520_v23  ;;  %1116 = vperm.xlu1 %2874, %v3520_v23   ;;  %v1043_v28 = vsub.f32 %v3516_v18, %v3523_v24  ;;  %1909 = vst.msk [vmem:[#allocation2 + $0x7] sm:$0x1] %vm393_vm1, %v3523_v24 }
 0x1be   : > { %v1056_v1 = vmul.f32 1.442695, %v1042_v27  ;;  %v1160_v27 = vld [vmem:[#allocation3 + $0x4] sm:$0x1] }
 0x1c0   : > { %1125 = vperm.xlu1 %2874, %v3523_v24  }
 0x21f   : > { %v1063_v34 = vpop.permute.xlu0 %1062 }
 0x220   : > { %v1068_v35 = vrot.slane %v1063_v34, %v3538_v31 }
 0x222   : > { %v1132_v36 = vsub.f32 %v3423_v19, %v1068_v35 }
 0x223   : > { %v1072_v37 = vpop.permute.xlu1 %1071 }
 0x224   : > { %v1140_v40 = vmul.f32 1.442695, %v1132_v36  ;;  %v1077_v41 = vrot.slane %v1072_v37, %v3538_v31 }
 0x226   : > { %2875 = vpow2.f32 %v1140_v40  ;;  %v1133_v42 = vsub.f32 %v3425_v20, %v1077_v41 }
 0x227   : > { %v1081_v43 = vpop.permute.xlu1 %1080 }
 0x228   : > { %v1142_v45 = vmul.f32 1.442695, %v1133_v42  ;;  %v1086_v49 = vrot.slane %v1081_v43, %v3538_v31 }
 0x22a   : > { %2877 = vpow2.f32 %v1142_v45  ;;  %v1134_v53 = vsub.f32 %v3431_v25, %v1086_v49 }
 0x22b   : > { %v1090_v57 = vpop.permute.xlu1 %1089 }
 0x22c   : > { %v1144_v62 = vmul.f32 1.442695, %v1134_v53  ;;  %v1095_v63 = vrot.slane %v1090_v57, %v3538_v31 }
 0x22e   : > { %2879 = vpow2.f32 %v1144_v62  ;;  %v1135_v19 = vsub.f32 %v3433_v26, %v1095_v63  ;;  %v1048_v63 = vmul.f32 1.442695, %v1038_v56  ;;  %v1156_v56 = vld [vmem:[#allocation3] sm:$0x1] }
 0x22f   : > { %v1099_v21 = vpop.permute.xlu1 %1098 }
 0x230   : > { %v1146_v22 = vmul.f32 1.442695, %v1135_v19  ;;  %v1104_v29 = vrot.slane %v1099_v21, %v3538_v31  ;;  %v1058_v21 = vmul.f32 1.442695, %v1043_v28  ;;  %v1161_v28 = vld [vmem:[#allocation3 + $0x5] sm:$0x1] }
 0x232   : > { %2881 = vpow2.f32 %v1146_v22  ;;  %v1136_v20 = vsub.f32 %v3439_v32, %v1104_v29 }
 0x233   : > { %v2876_v34 = vpop.eup %2875  ;;  %v1108_v35 = vpop.permute.xlu1 %1107 }
 0x234   : > { %v1148_v36 = vmul.f32 1.442695, %v1136_v20  ;;  %v1113_v25 = vrot.slane %v1108_v35, %v3538_v31  ;;  %2657 = vmatmul.mubr.msk.f32.vlgmr.msra.gmra.mxu0 %vm1301_vm3, %v2876_v34  ;;  %v1172_v37 = vsel %vm1003_vm2, %v2876_v34, 0.0  ;;  %v1159_v20 = vld [vmem:[#allocation3 + $0x3] sm:$0x1] }
 0x235   : > { %1173 = vadd.xlane.f32.xlu1 %v1172_v37  ;;  %2667 = vmatpush3.msra.mxu0 %v3318_v6 }
 0x236   : > { %2883 = vpow2.f32 %v1148_v36  ;;  %v1137_v26 = vsub.f32 %v3441_v33, %v1113_v25  ;;  %2668 = vmatprep.subr.mxu0 %v3094_v0  ;;  %2670 = vmatprep.mubr.msk.f32.mxu0 %vm3095_vm0, %v3094_v0 }
 0x237   : > { %v2878_v32 = vpop.eup %2877  ;;  %v1117_v40 = vpop.permute.xlu1 %1116  ;;  %2669 = vmatpush3.msra.mxu0 %v3328_v8 }
 0x238   : > { %v1150_v41 = vmul.f32 1.442695, %v1137_v26  ;;  %v1122_v42 = vrot.slane %v1117_v40, %v3538_v31  ;;  %2664 = vmatmul.mubr.msk.f32.vlgmr.msra.gmra.mxu1 %vm1301_vm3, %v2878_v32  ;;  %v1175_v43 = vsel %vm1003_vm2, %v2878_v32, 0.0  ;;  %2680 = vmatprep.subr.mxu0 %v3094_v0 }
 0x239   : > { %1176 = vadd.xlane.f32.xlu0 %v1175_v43  ;;  %2674 = vmatpush3.msra.mxu1 %v3322_v7 }
 0x23a   : > { %2885 = vpow2.f32 %v1150_v41  ;;  %v1138_v6 = vsub.f32 %v3447_v38, %v1122_v42  ;;  %2675 = vmatprep.subr.mxu1 %v3094_v0  ;;  %2677 = vmatprep.mubr.msk.f32.mxu1 %vm3095_vm0, %v3094_v0  ;;  %v1162_v42 = vld [vmem:[#allocation3 + $0x6] sm:$0x1] }
 0x23b   : > { %v2880_v8 = vpop.eup %2879  ;;  %v1126_v33 = vpop.permute.xlu1 %1125  ;;  %2676 = vmatpush3.msra.mxu1 %v3332_v9 }
 0x23c   : > { %v1152_v45 = vmul.f32 1.442695, %v1138_v6  ;;  %v1131_v49 = vrot.slane %v1126_v33, %v3538_v31  ;;  %2671 = vmatmul.mubr.msk.f32.vlgmr.msra.gmra.mxu0 %vm1301_vm3, %v2880_v8  ;;  %v1178_v53 = vsel %vm1003_vm2, %v2880_v8, 0.0  ;;  %2687 = vmatprep.subr.mxu1 %v3094_v0 }
 0x23d   : > { %1179 = vadd.xlane.f32.xlu0 %v1178_v53  ;;  %2681 = vmatpush3.msra.mxu0 %v3342_v10 }
 0x23e   : > { %2887 = vpow2.f32 %v1152_v45  ;;  %v1139_v7 = vsub.f32 %v3449_v39, %v1131_v49  ;;  %2682 = vmatprep.subr.mxu0 %v3094_v0  ;;  %2684 = vmatprep.mubr.msk.f32.mxu0 %vm3095_vm0, %v3094_v0  ;;  %v1163_v49 = vld [vmem:[#allocation3 + $0x7] sm:$0x1] }
 0x23f   : > { %v2882_v9 = vpop.eup %2881  ;;  %2683 = vmatpush3.msra.mxu0 %v3352_v12 }
 0x240   : > { %v1154_v38 = vmul.f32 1.442695, %v1139_v7  ;;  %2678 = vmatmul.mubr.msk.f32.vlgmr.msra.gmra.mxu1 %vm1301_vm3, %v2882_v9  ;;  %v1181_v57 = vsel %vm1003_vm2, %v2882_v9, 0.0  ;;  %2694 = vmatprep.subr.mxu0 %v3094_v0 }
 0x241   : > { %1182 = vadd.xlane.f32.xlu1 %v1181_v57  ;;  %2688 = vmatpush3.msra.mxu1 %v3346_v11 }
 0x242   : > { %2889 = vpow2.f32 %v1154_v38  ;;  %2689 = vmatprep.subr.mxu1 %v3094_v0  ;;  %2691 = vmatprep.mubr.msk.f32.mxu1 %vm3095_vm0, %v3094_v0 }
 0x243   : > { %v2884_v10 = vpop.eup %2883  ;;  %2690 = vmatpush3.msra.mxu1 %v3356_v13 }
 0x244   : > { %2685 = vmatmul.mubr.msk.f32.vlgmr.msra.gmra.mxu0 %vm1301_vm3, %v2884_v10  ;;  %v1184_v12 = vsel %vm1003_vm2, %v2884_v10, 0.0  ;;  %2701 = vmatprep.subr.mxu1 %v3094_v0 }
 0x245   : > { %1185 = vadd.xlane.f32.xlu0 %v1184_v12  ;;  %2695 = vmatpush3.msra.mxu0 %v3366_v14  ;;  %v2040_v12 = vld [vmem:[#allocation8 + $0x78] sm:$0xff] }
 0x246   : > { %2696 = vmatprep.subr.mxu0 %v3094_v0  ;;  %2698 = vmatprep.mubr.msk.f32.mxu0 %vm3095_vm0, %v3094_v0 }
 0x247   : > { %v2886_v11 = vpop.eup %2885  ;;  %2697 = vmatpush3.msra.mxu0 %v3376_v16 }
 0x248   : > { %2692 = vmatmul.mubr.msk.f32.vlgmr.msra.gmra.mxu1 %vm1301_vm3, %v2886_v11  ;;  %v1187_v13 = vsel %vm1003_vm2, %v2886_v11, 0.0  ;;  %2708 = vmatprep.subr.mxu0 %v3094_v0 }
 0x249   : > { %1188 = vadd.xlane.f32.xlu1 %v1187_v13  ;;  %2702 = vmatpush3.msra.mxu1 %v3370_v15  ;;  %v1044_v15 = vmul.f32 1.442695, %v1036_v48  ;;  %v2039_v13 = vld [vmem:[#allocation8 + $0x70] sm:$0xff] }
 0x24a   : > { %2703 = vmatprep.subr.mxu1 %v3094_v0  ;;  %2705 = vmatprep.mubr.msk.f32.mxu1 %vm3095_vm0, %v3094_v0 }
 0x24b   : > { %v2888_v14 = vpop.eup %2887  ;;  %2704 = vmatpush3.msra.mxu1 %v3380_v17  ;;  %v1046_v17 = vmul.f32 1.442695, %v1037_v52  ;;  %2891 = vpow2.f32 %v1044_v15  ;;  %v2036_v15 = vld [vmem:[#allocation8 + $0x58] sm:$0xff] }
 0x24c   : > { %2699 = vmatmul.mubr.msk.f32.vlgmr.msra.gmra.mxu0 %vm1301_vm3, %v2888_v14  ;;  %v1190_v16 = vsel %vm1003_vm2, %v2888_v14, 0.0  ;;  %2713 = vmatprep.subr.mxu1 %v3094_v0  ;;  %v2038_v14 = vld [vmem:[#allocation8 + $0x68] sm:$0xff] }
 0x24d   : > { %1191 = vadd.xlane.f32.xlu0 %v1190_v16  ;;  %2710 = vmatprep.mubr.msk.f32.mxu0 %vm3095_vm0, %v3094_v0  ;;  %2893 = vpow2.f32 %v1046_v17  ;;  %v2034_v17 = vld [vmem:[#allocation8 + $0x48] sm:$0xff] }
 0x24e   : > { %2895 = vpow2.f32 %v1048_v63 }
 0x24f   : > { %v2890_v39 = vpop.eup %2889  ;;  %2897 = vpow2.f32 %v1050_v44  ;;  %v2033_v44 = vld [vmem:[#allocation8 + $0x40] sm:$0xff] }
 0x250   : > { %2706 = vmatmul.mubr.msk.f32.vlgmr.msra.gmra.mxu1 %vm1301_vm3, %v2890_v39  ;;  %v1193_v62 = vsel %vm1003_vm2, %v2890_v39, 0.0  ;;  %2899 = vpow2.f32 %v1052_v46  ;;  %v2037_v39 = vld [vmem:[#allocation8 + $0x60] sm:$0xff]  ;;  %v2042_v46 = vld [vmem:[%s3759_s4] sm:$0xf] }
 0x251   : > { %1194 = vadd.xlane.f32.xlu1 %v1193_v62  ;;  %2745 = vmatprep.mubr.msk.f32.mxu1 %vm3095_vm0, %v3094_v0  ;;  %2901 = vpow2.f32 %v1054_v47  ;;  %v2035_v62 = vld [vmem:[#allocation8 + $0x50] sm:$0xff]  ;;  %v2032_v47 = vld [vmem:[#allocation8 + $0x38] sm:$0xff] }
 0x252   : > { %2903 = vpow2.f32 %v1056_v1  ;;  %2714 = vmatpush3.msra.mxu1 %v2040_v12  ;;  %2709 = vmatpush3.msk.msra.mxu0 %vm2047_vm4, %v2042_v46  ;;  %v2029_v1 = vld [vmem:[#allocation8 + $0x20] sm:$0xff]  ;;  %v2269_v12 = vld [vmem:[#allocation10 + $0x58] sm:$0xff] }
 0x253   : > { %2905 = vpow2.f32 %v1058_v21  ;;  %2715 = vmatprep.subr.mxu1 %v3094_v0  ;;  %2748 = vmatprep.subr.mxu0 %v3094_v0 }
 0x254   : > { %2716 = vmatpush3.msra.mxu1 %v2039_v13 }
 0x255   : > { %2717 = vmatprep.subr.mxu1 %v3094_v0 }
 0x256   : > { %2718 = vmatpush3.msra.mxu1 %v2038_v14  ;;  %v2268_v14 = vld [vmem:[#allocation10 + $0x50] sm:$0xff] }
 0x257   : > { %2719 = vmatprep.subr.mxu1 %v3094_v0 }
 0x258   : > { %v2892_v48 = vpop.eup %2891  ;;  %2720 = vmatpush3.msra.mxu1 %v2037_v39 }
 0x259   : > { %v1164_v58 = vmul.f32 %v2892_v48, %v1156_v56  ;;  %2721 = vmatprep.subr.mxu1 %v3094_v0 }
 0x25a   : > { %v2894_v50 = vpop.eup %2893  ;;  %2722 = vmatpush3.msra.mxu1 %v2036_v15  ;;  %v2267_v15 = vld [vmem:[#allocation10 + $0x48] sm:$0xff] }
 0x25b   : > { %v2896_v51 = vpop.eup %2895  ;;  %v1165_v2 = vmul.f32 %v2894_v50, %v1157_v61  ;;  %2723 = vmatprep.subr.mxu1 %v3094_v0 }
 0x25c   : > { %v2898_v52 = vpop.eup %2897  ;;  %v1166_v22 = vmul.f32 %v2896_v51, %v1158_v4  ;;  %2724 = vmatpush3.msra.mxu1 %v2035_v62  ;;  %v2028_v4 = vld [vmem:[#allocation8 + $0x18] sm:$0xff] }
 0x25d   : > { %v2900_v54 = vpop.eup %2899  ;;  %v1167_v5 = vmul.f32 %v2898_v52, %v1159_v20  ;;  %2725 = vmatprep.subr.mxu1 %v3094_v0  ;;  %v1215_v20 = vld [vmem:[#allocation4 + $0x2] sm:$0x1] }
 0x25e   : > { %v2902_v55 = vpop.eup %2901  ;;  %v1168_v18 = vmul.f32 %v2900_v54, %v1160_v27  ;;  %2726 = vmatpush3.msra.mxu1 %v2034_v17  ;;  %v2266_v17 = vld [vmem:[#allocation10 + $0x40] sm:$0xff] }
 0x25f   : > { %v1169_v32 = vmul.f32 %v2902_v55, %v1161_v28  ;;  %v2904_v40 = vpop.eup %2903  ;;  %2727 = vmatprep.subr.mxu1 %v3094_v0  ;;  %v2025_v28 = vld [vmem:[#allocation8] sm:$0xff] }
 0x260   : > { %v1170_v8 = vmul.f32 %v2904_v40, %v1162_v42  ;;  %v2906_v33 = vpop.eup %2905  ;;  %2728 = vmatpush3.msra.mxu1 %v2033_v44  ;;  %v2272_v42 = vld [vmem:[#allocation10 + $0x70] sm:$0xff]  ;;  %v2265_v44 = vld [vmem:[#allocation10 + $0x38] sm:$0xff] }
 0x261   : > { %v1171_v9 = vmul.f32 %v2906_v33, %v1163_v49  ;;  %2729 = vmatprep.subr.mxu1 %v3094_v0 }
 0x262   : > { %1223 = vperm.xlu1 %2874, %v2892_v48   ;;  %2730 = vmatpush3.msra.mxu1 %v2032_v47  ;;  %v2264_v47 = vld [vmem:[#allocation10 + $0x30] sm:$0xff] }
 0x263   : > { %1232 = vperm.xlu0 %2873, %v2894_v50   ;;  %2731 = vmatprep.subr.mxu1 %v3094_v0 }
 0x266   : > { %1241 = vperm.xlu1 %2874, %v2896_v51   ;;  %v1213_v51 = vld [vmem:[#allocation4] sm:$0x1] }
 0x267   : > { %1250 = vperm.xlu0 %2873, %v2898_v52   ;;  %v2031_v52 = vld [vmem:[#allocation8 + $0x30] sm:$0xff] }
 0x268   : > { %2732 = vmatpush3.msra.mxu1 %v2031_v52  ;;  %v2262_v52 = vld [vmem:[#allocation10 + $0x20] sm:$0xff] }
 0x269   : > { %2733 = vmatprep.subr.mxu1 %v3094_v0 }
 0x26a   : > { %1259 = vperm.xlu1 %2874, %v2900_v54   ;;  %v2041_v54 = vld [vmem:[%s388_s20] sm:$0xff]  ;;  %s3009_s20 = scalar_lea.vmem %s3008_s30, 256 }
 0x26b   : > { %1268 = vperm.xlu0 %2873, %v2902_v55   ;;  %v2030_v55 = vld [vmem:[#allocation8 + $0x28] sm:$0xff]  ;;  %2711 = vmatmul.mubr.msk.f32.vlgmr.msra.gmra.mxu0 %vm2043_vm5, %v2041_v54  ;;  %p3011_p11 = scmp.lt.s32.totalorder %s3009_s20, %s3003_s14 }
 0x26c   : > { %2780 = vmatprep.mubr.msk.f32.mxu0 %vm3095_vm0, %v3094_v0  ;;  %2734 = vmatpush3.msra.mxu1 %v2030_v55 }
 0x26d   : > { %2735 = vmatprep.subr.mxu1 %v3094_v0  ;;  %p3012_p2 = por %p3011_p11, %p3010_p10 }
 0x26e   : > { %2736 = vmatpush3.msra.mxu1 %v2029_v1 }
 0x26f   : > { %2737 = vmatprep.subr.mxu1 %v3094_v0  ;;  %p3013_p9 = pnand %p3012_p2, %p3006_p8 }
 0x270   : > { %2738 = vmatpush3.msra.mxu1 %v2028_v4 }
 0x271   : > { %2739 = vmatprep.subr.mxu1 %v3094_v0 }
 0x2be   : > { %v1174_v59 = vpop.xlane.xlu1 %1173 }
 0x2bf   : > { %v1196_v60 = vadd.f32 %v1174_v59, %v1164_v58 }
 0x2c1   : > { %1205 = vst.msk [vmem:[#allocation3] sm:$0x1] %vm393_vm1, %v1196_v60  ;;  %v1214_v60 = vld [vmem:[#allocation4 + $0x1] sm:$0x1] }
 0x2c2   : > { %v1177_v3 = vpop.xlane.xlu0 %1176 }
 0x2c3   : > { %v1197_v19 = vadd.f32 %v1177_v3, %v1165_v2 }
 0x2c5   : > { %1206 = vst.msk [vmem:[#allocation3 + $0x1] sm:$0x1] %vm393_vm1, %v1197_v19 }
 0x2c6   : > { %v1180_v29 = vpop.xlane.xlu0 %1179 }
 0x2c7   : > { %v1198_v34 = vadd.f32 %v1180_v29, %v1166_v22 }
 0x2c8   : > { %v1921_v35 = vld [vmem:[#allocation3] sm:$0x1] }
 0x2c9   : > { %1207 = vst.msk [vmem:[#allocation3 + $0x2] sm:$0x1] %vm393_vm1, %v1198_v34  ;;  %1931 = vperm.xlu0 %2873, %v1921_v35   ;;  %v2027_v34 = vld [vmem:[#allocation8 + $0x10] sm:$0xff] }
 0x2ca   : > { %v1183_v23 = vpop.xlane.xlu1 %1182  ;;  %2740 = vmatpush3.msra.mxu1 %v2027_v34 }
 0x2cb   : > { %v1199_v36 = vadd.f32 %v1183_v23, %v1167_v5  ;;  %v2026_v23 = vld [vmem:[#allocation8 + $0x8] sm:$0xff]  ;;  %2741 = vmatprep.subr.mxu1 %v3094_v0 }
 0x2cc   : > { %v1922_v25 = vld [vmem:[#allocation3 + $0x1] sm:$0x1]  ;;  %2742 = vmatpush3.msra.mxu1 %v2026_v23 }
 0x2cd   : > { %1208 = vst.msk [vmem:[#allocation3 + $0x3] sm:$0x1] %vm393_vm1, %v1199_v36  ;;  %1940 = vperm.xlu1 %2874, %v1922_v25   ;;  %2743 = vmatprep.subr.mxu1 %v3094_v0 }
 0x2ce   : > { %v1186_v24 = vpop.xlane.xlu0 %1185  ;;  %2744 = vmatpush3.msra.mxu1 %v2025_v28 }
 0x2cf   : > { %v1200_v37 = vadd.f32 %v1186_v24, %v1168_v18  ;;  %v1216_v24 = vld [vmem:[#allocation4 + $0x3] sm:$0x1] }
 0x2d0   : > { %v1923_v26 = vld [vmem:[#allocation3 + $0x2] sm:$0x1] }
 0x2d1   : > { %1209 = vst.msk [vmem:[#allocation3 + $0x4] sm:$0x1] %vm393_vm1, %v1200_v37  ;;  %1949 = vperm.xlu1 %2874, %v1923_v26  }
 0x2d2   : > { %v1189_v41 = vpop.xlane.xlu1 %1188 }
 0x2d3   : > { %v1201_v43 = vadd.f32 %v1189_v41, %v1169_v32  ;;  %v2273_v41 = vld [vmem:[#allocation10 + $0x78] sm:$0xff] }
 0x2d4   : > { %v1924_v6 = vld [vmem:[#allocation3 + $0x3] sm:$0x1]  ;;  %2749 = vmatpush3.msra.mxu0 %v2273_v41 }
 0x2d5   : > { %1210 = vst.msk [vmem:[#allocation3 + $0x5] sm:$0x1] %vm393_vm1, %v1201_v43  ;;  %1958 = vperm.xlu0 %2873, %v1924_v6   ;;  %2750 = vmatprep.subr.mxu0 %v3094_v0 }
 0x2d6   : > { %v1192_v45 = vpop.xlane.xlu0 %1191  ;;  %2751 = vmatpush3.msra.mxu0 %v2272_v42 }
 0x2d7   : > { %v1202_v53 = vadd.f32 %v1192_v45, %v1170_v8  ;;  %v1217_v8 = vld [vmem:[#allocation4 + $0x4] sm:$0x1]  ;;  %v2271_v45 = vld [vmem:[#allocation10 + $0x68] sm:$0xff]  ;;  %2752 = vmatprep.subr.mxu0 %v3094_v0 }
 0x2d8   : > { %v1925_v7 = vld [vmem:[#allocation3 + $0x4] sm:$0x1]  ;;  %2753 = vmatpush3.msra.mxu0 %v2271_v45 }
 0x2d9   : > { %1211 = vst.msk [vmem:[#allocation3 + $0x6] sm:$0x1] %vm393_vm1, %v1202_v53  ;;  %1967 = vperm.xlu1 %2874, %v1925_v7   ;;  %2754 = vmatprep.subr.mxu0 %v3094_v0 }
 0x2da   : > { %v1195_v38 = vpop.xlane.xlu1 %1194 }
 0x2db   : > { %v1203_v57 = vadd.f32 %v1195_v38, %v1171_v9  ;;  %v2270_v9 = vld [vmem:[#allocation10 + $0x60] sm:$0xff] }
 0x2dc   : > { %v1926_v10 = vld [vmem:[#allocation3 + $0x5] sm:$0x1]  ;;  %2755 = vmatpush3.msra.mxu0 %v2270_v9 }
 0x2dd   : > { %1212 = vst.msk [vmem:[#allocation3 + $0x7] sm:$0x1] %vm393_vm1, %v1203_v57  ;;  %1976 = vperm.xlu0 %2873, %v1926_v10   ;;  %v1218_v57 = vld [vmem:[#allocation4 + $0x5] sm:$0x1]  ;;  %2756 = vmatprep.subr.mxu0 %v3094_v0 }
 0x2de   : > { %v1224_v63 = vpop.permute.xlu1 %1223  ;;  %v1233_v50 = vpop.permute.xlu0 %1232  ;;  %2757 = vmatpush3.msra.mxu0 %v2269_v12 }
 0x2df   : > { %v1229_v48 = vrot.slane %v1224_v63, %v3538_v31  ;;  %v1238_v56 = vrot.slane %v1233_v50, %v3538_v31  ;;  %2758 = vmatprep.subr.mxu0 %v3094_v0  ;;  %v2263_v50 = vld [vmem:[#allocation10 + $0x28] sm:$0xff] }
 0x2e0   : > { %v1927_v11 = vld [vmem:[#allocation3 + $0x6] sm:$0x1]  ;;  %2759 = vmatpush3.msra.mxu0 %v2268_v14 }
 0x2e1   : > { %1985 = vperm.xlu1 %2874, %v1927_v11   ;;  %v1293_v58 = vmul.f32 %v1229_v48, %v1213_v51  ;;  %v1294_v21 = vmul.f32 %v1238_v56, %v1214_v60  ;;  %2760 = vmatprep.subr.mxu0 %v3094_v0 }
 0x2e2   : > { %v1242_v59 = vpop.permute.xlu1 %1241  ;;  %v1251_v22 = vpop.permute.xlu0 %1250  ;;  %2761 = vmatpush3.msra.mxu0 %v2267_v15 }
 0x2e3   : > { %v1247_v19 = vrot.slane %v1242_v59, %v3538_v31  ;;  %v1256_v27 = vrot.slane %v1251_v22, %v3538_v31  ;;  %2762 = vmatprep.subr.mxu0 %v3094_v0 }
 0x2e4   : > { %v1928_v16 = vld [vmem:[#allocation3 + $0x7] sm:$0x1]  ;;  %2763 = vmatpush3.msra.mxu0 %v2266_v17 }
 0x2e5   : > { %1277 = vperm.xlu1 %2874, %v2904_v40   ;;  %1994 = vperm.xlu0 %2873, %v1928_v16   ;;  %v1295_v36 = vmul.f32 %v1247_v19, %v1215_v20  ;;  %v1296_v40 = vmul.f32 %v1256_v27, %v1216_v24  ;;  %v1220_v27 = vld [vmem:[#allocation4 + $0x7] sm:$0x1] }
 0x2e6   : > { %v1260_v25 = vpop.permute.xlu1 %1259  ;;  %v1269_v43 = vpop.permute.xlu0 %1268  ;;  %2764 = vmatprep.subr.mxu0 %v3094_v0 }
 0x2e7   : > { %v1265_v32 = vrot.slane %v1260_v25, %v3538_v31  ;;  %v1274_v53 = vrot.slane %v1269_v43, %v3538_v31  ;;  %2765 = vmatpush3.msra.mxu0 %v2265_v44 }
 0x2e8   : > { %2766 = vmatprep.subr.mxu0 %v3094_v0 }
 0x2e9   : > { %1286 = vperm.xlu0 %2873, %v2906_v33   ;;  %v1297_v7 = vmul.f32 %v1265_v32, %v1217_v8  ;;  %v1298_v13 = vmul.f32 %v1274_v53, %v1218_v57  ;;  %2767 = vmatpush3.msra.mxu0 %v2264_v47  ;;  %v3098_v32 = vmov 1966171168  }
 0x2ea   : > { %2768 = vmatprep.subr.mxu0 %v3094_v0 }
 0x2eb   : > { %2769 = vmatpush3.msra.mxu0 %v2263_v50 }
 0x2ec   : > { %2770 = vmatprep.subr.mxu0 %v3094_v0 }
 0x2ed   : > { %2771 = vmatpush3.msra.mxu0 %v2262_v52 }
 0x2ee   : > { %2772 = vmatprep.subr.mxu0 %v3094_v0 }
 0x2f4   : > { %v1371_v61 = vpop.f32.mrf.mxu0 }
 0x2f5   : > { %v1886_v2 = vadd.f32 %v1371_v61, %v1293_v58 }
 0x2f6   : > { %v2658_v3 = vpop.f32.mrf.mxu0 }
 0x2f7   : > { %1894 = vst [vmem:[#allocation4] sm:$0x1] %v1886_v2 }
 0x2f8   : > { %v1444_v29 = vpop.f32.mrf.mxu1 }
 0x2f9   : > { %v1887_v35 = vadd.f32 %v1444_v29, %v1294_v21  ;;  %v1219_v29 = vld [vmem:[#allocation4 + $0x6] sm:$0x1] }
 0x2fa   : > { %v2665_v5 = vpop.f32.mrf.mxu1 }
 0x2fb   : > { %1895 = vst [vmem:[#allocation4 + $0x1] sm:$0x1] %v1887_v35 }
 0x2fc   : > { %v1517_v18 = vpop.f32.mrf.mxu0 }
 0x2fd   : > { %v1888_v37 = vadd.f32 %v1517_v18, %v1295_v36 }
 0x2fe   : > { %v2672_v26 = vpop.f32.mrf.mxu0 }
 0x2ff   : > { %1896 = vst [vmem:[#allocation4 + $0x2] sm:$0x1] %v1888_v37 }
 0x300   : > { %v1590_v6 = vpop.f32.mrf.mxu1 }
 0x301   : > { %v1889_v33 = vadd.f32 %v1590_v6, %v1296_v40  ;;  %v2134_v40 = vunpack.c.l.s4 %v3098_v32 }
 0x302   : > { %v2679_v49 = vpop.f32.mrf.mxu1 }
 0x303   : > { %1897 = vst [vmem:[#allocation4 + $0x3] sm:$0x1] %v1889_v33  ;;  %v1914_v33 = vld [vmem:[#allocation4 + $0x1] sm:$0x1] }
 0x304   : > { %v1663_v38 = vpop.f32.mrf.mxu0 }
 0x305   : > { %v1890_v10 = vadd.f32 %v1663_v38, %v1297_v7  ;;  %v2135_v7 = vunpack.c.0.s8 %v2134_v40 }
 0x306   : > { %v2686_v11 = vpop.f32.mrf.mxu0  ;;  %v1915_v45 = vld [vmem:[#allocation4 + $0x2] sm:$0x1] }
 0x307   : > { %1898 = vst [vmem:[#allocation4 + $0x4] sm:$0x1] %v1890_v10  ;;  %v2138_v15 = vsub.s32 %v2135_v7, %v3535_v30  ;;  %v2260_v30 = vld [vmem:[#allocation10 + $0x10] sm:$0xff] }
 0x308   : > { %v1736_v16 = vpop.f32.mrf.mxu1 }
 0x309   : > { %v1891_v39 = vadd.f32 %v1736_v16, %v1298_v13 }
 0x30a   : > { %v2693_v62 = vpop.f32.mrf.mxu1  ;;  %v1916_v42 = vld [vmem:[#allocation4 + $0x3] sm:$0x1] }
 0x30b   : > { %1899 = vst [vmem:[#allocation4 + $0x5] sm:$0x1] %v1891_v39 }
 0x30c   : > { %v1809_v63 = vpop.f32.mrf.mxu0 }
 0x30e   : > { %v2700_v46 = vpop.f32.mrf.mxu0  ;;  %v1917_v11 = vld [vmem:[#allocation4 + $0x4] sm:$0x1] }
 0x310   : > { %v1882_v48 = vpop.f32.mrf.mxu1 }
 0x312   : > { %v2707_v51 = vpop.f32.mrf.mxu1  ;;  %v1918_v38 = vld [vmem:[#allocation4 + $0x5] sm:$0x1] }
 0x344   : > { %v1932_v55 = vpop.permute.xlu0 %1931 }
 0x345   : > { %v1937_v3 = vrot.slane %v1932_v55, %v3538_v31 }
 0x348   : > { %v1941_v54 = vpop.permute.xlu1 %1940 }
 0x349   : > { %v1946_v61 = vrot.slane %v1941_v54, %v3538_v31 }
 0x34c   : > { %v1950_v56 = vpop.permute.xlu1 %1949 }
 0x34d   : > { %v1955_v2 = vrot.slane %v1950_v56, %v3538_v31 }
 0x350   : > { %v1959_v58 = vpop.permute.xlu0 %1958 }
 0x351   : > { %v1964_v59 = vrot.slane %v1959_v58, %v3538_v31 }
 0x353   : > { %2907 = vrcp.f32 %v1964_v59 }
 0x354   : > { %v1968_v60 = vpop.permute.xlu1 %1967  ;;  %2909 = vrcp.f32 %v1946_v61  ;;  %v2117_v61 = vpop.f32.mrf.mxu0 }
 0x355   : > { %2911 = vrcp.f32 %v1955_v2  ;;  %v1973_v21 = vrot.slane %v1968_v60, %v3538_v31  ;;  %v2259_v2 = vld [vmem:[#allocation10 + $0x8] sm:$0xff] }
 0x356   : > { %2913 = vrcp.f32 %v1937_v3  ;;  %v2712_v60 = vpop.f32.mrf.mxu0  ;;  %v2258_v3 = vld [vmem:[#allocation10] sm:$0xff] }
 0x358   : > { %v1977_v1 = vpop.permute.xlu0 %1976 }
 0x359   : > { %v1982_v4 = vrot.slane %v1977_v1, %v3538_v31  ;;  %v2261_v1 = vld [vmem:[#allocation10 + $0x18] sm:$0xff] }
 0x35a   : > { %2773 = vmatpush3.msra.mxu0 %v2261_v1 }
 0x35b   : > { %2915 = vrcp.f32 %v1982_v4  ;;  %2774 = vmatprep.subr.mxu0 %v3094_v0 }
 0x35c   : > { %v1986_v19 = vpop.permute.xlu1 %1985  ;;  %2917 = vrcp.f32 %v1973_v21  ;;  %2775 = vmatpush3.msra.mxu0 %v2260_v30 }
 0x35d   : > { %v1991_v22 = vrot.slane %v1986_v19, %v3538_v31  ;;  %2776 = vmatprep.subr.mxu0 %v3094_v0  ;;  %v2504_v19 = vld [vmem:[%s3760_s5] ss:$0 sm:$0xff] }
 0x35e   : > { %2777 = vmatpush3.msra.mxu0 %v2259_v2 }
 0x35f   : > { %2919 = vrcp.f32 %v1991_v22  ;;  %2778 = vmatprep.subr.mxu0 %v3094_v0 }
 0x360   : > { %v1278_v20 = vpop.permute.xlu1 %1277  ;;  %v1995_v34 = vpop.permute.xlu0 %1994  ;;  %2779 = vmatpush3.msra.mxu0 %v2258_v3 }
 0x361   : > { %v1283_v35 = vrot.slane %v1278_v20, %v3538_v31  ;;  %v2000_v5 = vrot.slane %v1995_v34, %v3538_v31  ;;  %v2908_v28 = vpop.eup %2907  ;;  %v2505_v34 = vld [vmem:[%s3762_s7] ss:$0 sm:$0xff] }
 0x362   : > { %v2910_v37 = vpop.eup %2909  ;;  %v2008_v6 = vmul.f32 %v2908_v28, %v1916_v42 }
 0x363   : > { %v1299_v23 = vmul.f32 %v1283_v35, %v1219_v29  ;;  %2921 = vrcp.f32 %v2000_v5  ;;  %v2912_v41 = vpop.eup %2911  ;;  %v2004_v49 = vmul.f32 %v2910_v37, %v1914_v33 }
 0x364   : > { %v1287_v36 = vpop.permute.xlu0 %1286  ;;  %v2914_v43 = vpop.eup %2913  ;;  %v2006_v53 = vmul.f32 %v2912_v41, %v1915_v45 }
 0x365   : > { %v1892_v25 = vadd.f32 %v1809_v63, %v1299_v23  ;;  %v1292_v18 = vrot.slane %v1287_v36, %v3538_v31  ;;  %v1913_v31 = vld [vmem:[#allocation4] sm:$0x1] }
 0x366   : > { %v2002_v57 = vmul.f32 %v2914_v43, %v1913_v31  ;;  %v2130_v12 = vcombine.low %v2006_v53, %v2008_v6 }
 0x367   : > { %1900 = vst [vmem:[#allocation4 + $0x6] sm:$0x1] %v1892_v25  ;;  %v1300_v24 = vmul.f32 %v1292_v18, %v1220_v27 }
 0x368   : > { %v2916_v8 = vpop.eup %2915  ;;  %v2129_v39 = vcombine.low %v2002_v57, %v2004_v49  ;;  %v2146_v47 = vrot.slane %v2130_v12, %v2138_v15 }
 0x369   : > { %v1893_v26 = vadd.f32 %v1882_v48, %v1300_v24  ;;  %v2918_v9 = vpop.eup %2917  ;;  %v2012_v10 = vmul.f32 %v2916_v8, %v1918_v38 }
 0x36a   : > { %v2010_v16 = vmul.f32 %v2918_v9, %v1917_v11  ;;  %v2139_v50 = vrot.slane %v2129_v39, %v2138_v15 }
 0x36b   : > { %1901 = vst [vmem:[#allocation4 + $0x7] sm:$0x1] %v1893_v26 }
 0x36c   : > { %v2920_v14 = vpop.eup %2919  ;;  %v2131_v46 = vcombine.low %v2010_v16, %v2012_v10  ;;  %v2161_v54 = vcombine.low %v2139_v50, %v2146_v47 }
 0x36e   : > { %v1919_v13 = vld [vmem:[#allocation4 + $0x6] sm:$0x1]  ;;  %v2153_v51 = vrot.slane %v2131_v46, %v2138_v15  ;;  %v2169_v56 = vrot.slane %v2161_v54, %v2138_v15 }
 0x36f   : > { %v2014_v63 = vmul.f32 %v2920_v14, %v1919_v13 }
 0x370   : > { %v2922_v62 = vpop.eup %2921 }
 0x372   : > { %v1920_v17 = vld [vmem:[#allocation4 + $0x7] sm:$0x1] }
 0x373   : > { %v2016_v44 = vmul.f32 %v2922_v62, %v1920_v17 }
 0x375   : > { %v2132_v48 = vcombine.low %v2014_v63, %v2016_v44 }
 0x377   : > { %v2160_v52 = vrot.slane %v2132_v48, %v2138_v15 }
 0x379   : > { %v2162_v55 = vcombine.low %v2153_v51, %v2160_v52 }
 0x37b   : > { %v2176_v58 = vrot.slane %v2162_v55, %v2138_v15 }
 0x37d   : > { %v2177_v59 = vcombine.low %v2169_v56, %v2176_v58 }
 0x37f   : > { %2746 = vmatmul.mubr.f32.vlgmr.msra.gmra.mxu1 %v2177_v59 }
 0x43f   : > { %v2245_v4 = vpop.f32.mrf.mxu1 }
 0x440   : > { %v2246_v21 = vadd.f32 %v2245_v4, %v2117_v61 }
 0x441   : > { %v2747_v22 = vpop.f32.mrf.mxu1 }
 0x442   : > { %v2256_v29 = vadd.f32 %v2504_v19, %v2246_v21 }
 0x444   : > { %v2257_v20 = vmax.f32 %v2256_v29, 0.0 }
 0x446   : > { %2781 = vmatmul.mubr.f32.vlgmr.msra.gmra.mxu0 %v2257_v20 }
 0x506   : > { %v2347_v0 = vpop.f32.mrf.mxu0 }
 0x507   : > { %v2348_v35 = vadd.f32 %v2505_v34, %v2347_v0 }
 0x508   : > { %v2782_v5 = vpop.f32.mrf.mxu0 }
 0x509   : > { %2351 = vst [vmem:[%s382_s6] sm:$0xff] %v2348_v35 }
 0x50a   : > { %3016 = shalt.err (!%p3013_p9)
}
 0x50b   : > { %s3017_s24 = scalar_lea.hbm %s3713_s25, 128  ;;  %s3021_s22 = scalar_lea.hbm %s3763_s8, 256 }
 0x50c   : > { %p3018_p12 = scmp.ne.s32.totalorder %s3713_s25, %s3017_s24  ;;  %p3022_p7 = scmp.lt.s32.totalorder %s3713_s25, %s3763_s8 }
 0x50d   : > { %p3023_p5 = scmp.lt.s32.totalorder %s3021_s22, %s3017_s24 }
 0x50e   : > { %p3019_p13 = pnand %p3018_p12, %p3246_p3 }
 0x50f   : > { %p3024_p1 = por %p3023_p5, %p3022_p7 }
 0x510   : > { %p3020_p0 = pneg %p3019_p13 }
 0x512   : > { %p3025_p4 = pnand %p3024_p1, %p3020_p0 }
 0x514   : > { %3028 = shalt.err (!%p3025_p4)
}
 0x515   : > { %2793 = dma.vmem_to_hbm [thread:$0]  (%p3246_p3), %s2367_s13, 128, %s3713_s25, %s2353_s19  }
 0x516 PF: > { %s2378_s21 = sand.u32 1, %s3067_s27   ;;  %p3784_p6 = scmp.ne.s32.totalorder %s3774_s16, 0 }
 0x517   : > { %p3785_p8 = scmp.ge.s32.totalorder %s3087_s10, 2  ;;  %s2379_s6 = scalar_lea.sflag [#allocation7], %s2378_s21 }
 0x519   : > { %p2807_p10 = pnand %p3785_p8, %p3784_p6 }
 0x51b   : > { %p2808_p11 = pneg %p2807_p10 }
 0x51d   : > { %3062 = dma.done.wait (%p2808_p11), %s2379_s6, 128  }
 0x51e   : > { %3064 = vsyncadd (%p2808_p11), %s2379_s6, 4294967168  ;;  %s25_s10 = sadd.s32 1, %s3087_s10   ;;  %s3786_s30 = sld [smem:[#allocation15_spill]] }
 0x51f   : > { %p22_p2 = scmp.ge.s32.totalorder %s25_s10, 4   ;;  %s3787_s9 = sld [smem:[#allocation16_spill]] }
 0x520   : > { %s3788_s27 = smov %s3071_s28  ;;  %s3789_s28 = smov %s3075_s29 }
 0x521   : > { %s3790_s29 = smov %s3255_s18  ;;  %24 = sbr.rel (!%p22_p2) target bundleno = 10 (0xa), region = 116 }
 0x526   :  { %2384 = vsyncpa [#allocation6], 1 }
 0x527   :  { %2386 = vsyncpa [#allocation6 + $0x1], 1 }
 0x528   :  { %2387 = vsyncpa [#allocation9], 1 }
 0x529   :  { %2388 = vsyncpa [#allocation7], 1 }
 0x52a   :  { %2390 = vsyncpa [#allocation7 + $0x1], 1 }

</bundles_post_ra>
